<compile_context>
chip_gen: v7x
topology: tpu7x:2x2x1
jax: 0.10.0
libtpu: 0.0.40
codegen_flags: <defaults>
</compile_context>

<pallas_src>
import functools

import numpy as np
import jax
import jax.numpy as jnp
from jax.experimental import pallas as pl
from jax.experimental.pallas import tpu as pltpu


# --------------------------------------------------------------------------
# Fused attention-pooling kernel (one batch element per grid step)
# --------------------------------------------------------------------------
def _attn_pool_kernel(x_ref, wqkv_ref, bqkv_ref, wout_ref, bout_ref, bias_ref,
                      o_ref, *, num_heads, head_dim):
    C = num_heads * head_dim
    x = x_ref[0]                                                      # (T, C)

    # qkv 1x1 conv == token-wise matmul: (T, C) @ (C, 3C) + b
    qkv = jnp.dot(x, wqkv_ref[...],
                  preferred_element_type=jnp.float32) + bqkv_ref[...]  # (T, 3C)

    scale = float(head_dim) ** -0.5

    acc = None
    for h in range(num_heads):                       # static unroll (4 heads)
        lo, hi = h * head_dim, (h + 1) * head_dim
        q = qkv[:, lo:hi]                            # (T, hd)
        k = qkv[:, C + lo:C + hi]                    # (T, hd)
        v = qkv[:, 2 * C + lo:2 * C + hi]            # (T, hd)

        # q @ k^T without an explicit transpose (contract last dims of both).
        logits = jax.lax.dot_general(
            q, k, (((1,), (1,)), ((), ())),
            preferred_element_type=jnp.float32) * scale               # (T, T)
        logits = logits + bias_ref[h]                # relative positional bias

        # row-wise stable softmax
        m = jnp.max(logits, axis=-1, keepdims=True)
        p = jnp.exp(logits - m)
        attn = p / jnp.sum(p, axis=-1, keepdims=True)

        out_h = jnp.dot(attn, v, preferred_element_type=jnp.float32)  # (T, hd)

        # Fold the per-head channel concat into out_proj by splitting Wout
        # along its input-channel axis; partial products accumulate in f32.
        contrib = jnp.dot(out_h, wout_ref[lo:hi, :],
                          preferred_element_type=jnp.float32)         # (T, C)
        acc = contrib if acc is None else acc + contrib

    y = acc + bout_ref[...]                                           # (T, C)
    # Spatial mean pooling -> one (1, C) lane-resident vector per batch item.
    o_ref[0] = jnp.mean(y, axis=0, keepdims=True)


# --------------------------------------------------------------------------
# Wrapper: NCHW in, (B, C, 1, 1) out — matches the nn.Module forward
# --------------------------------------------------------------------------
def self_attention_pooling(x, params, num_heads=4):
    B, C, H, W = x.shape
    assert C % num_heads == 0
    head_dim = C // num_heads
    T = H * W

    # Channels-last token layout: tokens on sublanes, channels on lanes.
    x_tok = jnp.transpose(x.reshape(B, C, T), (0, 2, 1))               # (B, T, C)

    # PyTorch conv weights are (Cout, Cin, 1, 1); transpose to x @ W form.
    wqkv = jnp.transpose(params["qkv_w"].reshape(3 * C, C), (1, 0))    # (C, 3C)
    bqkv = params["qkv_b"].reshape(1, 3 * C)
    wout = jnp.transpose(params["out_w"].reshape(C, C), (1, 0))        # (C, C)
    bout = params["out_b"].reshape(1, C)

    # Relative positional bias, shared across the batch: (num_heads, T, T).
    gy = jnp.linspace(-1.0, 1.0, H, dtype=jnp.float32)
    gx = jnp.linspace(-1.0, 1.0, W, dtype=jnp.float32)
    gyy, gxx = jnp.meshgrid(gy, gx, indexing="ij")
    grid_pts = jnp.stack([gyy, gxx], axis=-1).reshape(T, 2)
    rel = grid_pts[:, None, :] - grid_pts[None, :, :]                  # (T, T, 2)
    rel_bias = jnp.einsum("ijk,hk->hij", rel, params["rel_bias"])      # (nh, T, T)

    kern = functools.partial(_attn_pool_kernel, num_heads=num_heads,
                             head_dim=head_dim)
    pooled = pl.pallas_call(
        kern,
        out_shape=jax.ShapeDtypeStruct((B, 1, C), jnp.float32),
        grid=(B,),
        in_specs=[
            pl.BlockSpec((1, T, C), lambda b: (b, 0, 0)),
            pl.BlockSpec((C, 3 * C), lambda b: (0, 0)),
            pl.BlockSpec((1, 3 * C), lambda b: (0, 0)),
            pl.BlockSpec((C, C), lambda b: (0, 0)),
            pl.BlockSpec((1, C), lambda b: (0, 0)),
            pl.BlockSpec((num_heads, T, T), lambda b: (0, 0, 0)),
        ],
        out_specs=pl.BlockSpec((1, 1, C), lambda b: (b, 0, 0)),
        compiler_params=pltpu.CompilerParams(
            dimension_semantics=("parallel",)),
    )(x_tok, wqkv, bqkv, wout, bout, rel_bias)

    return pooled.reshape(B, C, 1, 1)


# --------------------------------------------------------------------------
# High-precision numpy reference (mirrors the PyTorch forward exactly)
# --------------------------------------------------------------------------
def _reference_np(x, params, num_heads):
    x = np.asarray(x, np.float64)
    B, C, H, W = x.shape
    hd = C // num_heads
    T = H * W
    wqkv = np.asarray(params["qkv_w"], np.float64).reshape(3 * C, C)
    bqkv = np.asarray(params["qkv_b"], np.float64)
    wout = np.asarray(params["out_w"], np.float64).reshape(C, C)
    bout = np.asarray(params["out_b"], np.float64)
    rb = np.asarray(params["rel_bias"], np.float64)

    xt = x.reshape(B, C, T).transpose(0, 2, 1)                  # (B, T, C)
    qkv = xt @ wqkv.T + bqkv                                    # (B, T, 3C)
    q, k, v = np.split(qkv, 3, axis=-1)

    def heads(t):
        return t.reshape(B, T, num_heads, hd).transpose(0, 2, 1, 3)

    q, k, v = heads(q), heads(k), heads(v)
    logits = np.einsum("bhqd,bhkd->bhqk", q, k) * (hd ** -0.5)

    gy = np.linspace(-1.0, 1.0, H)
    gx = np.linspace(-1.0, 1.0, W)
    gyy, gxx = np.meshgrid(gy, gx, indexing="ij")
    grid_pts = np.stack([gyy, gxx], axis=-1).reshape(T, 2)
    rel = grid_pts[:, None, :] - grid_pts[None, :, :]
    rel_bias = np.einsum("ijk,hk->hij", rel, rb)
    logits = logits + rel_bias[None]

    logits = logits - logits.max(axis=-1, keepdims=True)
    p = np.exp(logits)
    attn = p / p.sum(axis=-1, keepdims=True)
    attn_out = np.einsum("bhqk,bhkd->bhqd", attn, v)            # (B, nh, T, hd)
    attn_out = attn_out.transpose(0, 2, 1, 3).reshape(B, T, C)
    out = attn_out @ wout.T + bout                              # (B, T, C)
    pooled = out.mean(axis=1)                                   # (B, C)
    return pooled.reshape(B, C, 1, 1).astype(np.float32)


# --------------------------------------------------------------------------
if __name__ == "__main__":
    key = jax.random.PRNGKey(0)
    kx, kw1, kb1, kw2, kb2, kr = jax.random.split(key, 6)

    B, C, H, W = 2, 32, 8, 8
    num_heads = 4

    params = {
        "qkv_w": jax.random.normal(kw1, (3 * C, C, 1, 1), jnp.float32) / np.sqrt(C),
        "qkv_b": 0.1 * jax.random.normal(kb1, (3 * C,), jnp.float32),
        "out_w": jax.random.normal(kw2, (C, C, 1, 1), jnp.float32) / np.sqrt(C),
        "out_b": 0.1 * jax.random.normal(kb2, (C,), jnp.float32),
        # nn.Parameter(torch.zeros(num_heads, 2)) in the module ctor; random
        # here so the relative-bias code path is actually exercised.
        "rel_bias": 0.5 * jax.random.normal(kr, (num_heads, 2), jnp.float32),
    }
    x = jax.random.normal(kx, (B, C, H, W), jnp.float32)

    fwd = jax.jit(functools.partial(self_attention_pooling, num_heads=num_heads))
    pooled = jax.block_until_ready(fwd(x, params))

    assert pooled.shape == (B, C, 1, 1), pooled.shape
    assert pooled.dtype == jnp.float32

    ref = _reference_np(x, params, num_heads)
    np.testing.assert_allclose(np.asarray(pooled), ref, rtol=2e-2, atol=2e-2)
    print("KERNEL_OK")
</pallas_src>

<mosaic_0001>
module attributes {stable_mosaic.version = 11 : i64} {
  func.func @_attn_pool_kernel(%arg0: i32, %arg1: memref<1x64x32xf32, #tpu.memory_space<vmem>>, %arg2: memref<32x96xf32, #tpu.memory_space<vmem>>, %arg3: memref<1x96xf32, #tpu.memory_space<vmem>>, %arg4: memref<32x32xf32, #tpu.memory_space<vmem>>, %arg5: memref<1x32xf32, #tpu.memory_space<vmem>>, %arg6: memref<4x64x64xf32, #tpu.memory_space<vmem>>, %arg7: memref<1x1x32xf32, #tpu.memory_space<vmem>>) attributes {dimension_semantics = [#tpu.dimension_semantics<parallel>], iteration_bounds = array<i64: 2>, scalar_prefetch = 0 : i64, scratch_operands = 0 : i64, tpu.core_type = #tpu.core_type<tc>, window_params = [{transform_indices = @transform_0, window_bounds = array<i64: 1, 64, 32>}, {pipeline_mode = #tpu.pipeline_mode<synchronous>, transform_indices = @transform_1, window_bounds = array<i64: 32, 96>}, {pipeline_mode = #tpu.pipeline_mode<synchronous>, transform_indices = @transform_2, window_bounds = array<i64: 1, 96>}, {pipeline_mode = #tpu.pipeline_mode<synchronous>, transform_indices = @transform_3, window_bounds = array<i64: 32, 32>}, {pipeline_mode = #tpu.pipeline_mode<synchronous>, transform_indices = @transform_4, window_bounds = array<i64: 1, 32>}, {pipeline_mode = #tpu.pipeline_mode<synchronous>, transform_indices = @transform_5, window_bounds = array<i64: 4, 64, 64>}, {transform_indices = @transform_6, window_bounds = array<i64: 1, 1, 32>}]} {
    %c0 = arith.constant 0 : index
    %c0_0 = arith.constant 0 : index
    %c0_1 = arith.constant 0 : index
    %0 = vector.load %arg1[%c0, %c0_0, %c0_1] : memref<1x64x32xf32, #tpu.memory_space<vmem>>, vector<1x64x32xf32>
    %1 = vector.shape_cast %0 : vector<1x64x32xf32> to vector<64x32xf32>
    %c0_2 = arith.constant 0 : index
    %c0_3 = arith.constant 0 : index
    %2 = vector.load %arg2[%c0_2, %c0_3] : memref<32x96xf32, #tpu.memory_space<vmem>>, vector<32x96xf32>
    %cst = arith.constant dense<0.000000e+00> : vector<64x96xf32>
    %3 = tpu.matmul %1, %2, %cst {dimension_numbers = #tpu.dot_dimension_numbers<[1], [0], [0], [1], [0, 0, 1, 1], [], []>} : vector<64x32xf32>, vector<32x96xf32>, vector<64x96xf32> -> vector<64x96xf32>
    %c0_4 = arith.constant 0 : index
    %c0_5 = arith.constant 0 : index
    %4 = vector.load %arg3[%c0_4, %c0_5] : memref<1x96xf32, #tpu.memory_space<vmem>>, vector<1x96xf32>
    %5 = vector.broadcast %4 : vector<1x96xf32> to vector<64x96xf32>
    %6 = arith.addf %3, %5 : vector<64x96xf32>
    %7 = vector.extract_strided_slice %6 {offsets = [0, 0], sizes = [64, 8], strides = [1, 1]} : vector<64x96xf32> to vector<64x8xf32>
    %8 = vector.extract_strided_slice %6 {offsets = [0, 32], sizes = [64, 8], strides = [1, 1]} : vector<64x96xf32> to vector<64x8xf32>
    %9 = vector.extract_strided_slice %6 {offsets = [0, 64], sizes = [64, 8], strides = [1, 1]} : vector<64x96xf32> to vector<64x8xf32>
    %cst_6 = arith.constant dense<0.000000e+00> : vector<64x64xf32>
    %10 = tpu.matmul %7, %8, %cst_6 {dimension_numbers = #tpu.dot_dimension_numbers<[1], [1], [0], [0], [0, 0, 1, 0], [], []>} : vector<64x8xf32>, vector<64x8xf32>, vector<64x64xf32> -> vector<64x64xf32>
    %cst_7 = arith.constant 0.353553385 : f32
    %11 = vector.broadcast %cst_7 : f32 to vector<64x64xf32>
    %12 = arith.mulf %10, %11 : vector<64x64xf32>
    %c0_8 = arith.constant 0 : index
    %c0_9 = arith.constant 0 : index
    %c0_10 = arith.constant 0 : index
    %13 = vector.load %arg6[%c0_8, %c0_9, %c0_10] : memref<4x64x64xf32, #tpu.memory_space<vmem>>, vector<1x64x64xf32>
    %14 = vector.shape_cast %13 : vector<1x64x64xf32> to vector<64x64xf32>
    %15 = arith.addf %12, %14 : vector<64x64xf32>
    %cst_11 = arith.constant dense<0xFF800000> : vector<64xf32>
    %16 = vector.multi_reduction <maximumf>, %15, %cst_11 [1] : vector<64x64xf32> to vector<64xf32>
    %17 = vector.shape_cast %16 : vector<64xf32> to vector<64x1xf32>
    %18 = vector.broadcast %17 : vector<64x1xf32> to vector<64x64xf32>
    %19 = arith.subf %15, %18 : vector<64x64xf32>
    %20 = math.exp %19 : vector<64x64xf32>
    %cst_12 = arith.constant dense<0.000000e+00> : vector<64xf32>
    %21 = vector.multi_reduction <add>, %20, %cst_12 [1] : vector<64x64xf32> to vector<64xf32>
    %22 = vector.shape_cast %21 : vector<64xf32> to vector<64x1xf32>
    %23 = vector.broadcast %22 : vector<64x1xf32> to vector<64x64xf32>
    %24 = arith.divf %20, %23 : vector<64x64xf32>
    %cst_13 = arith.constant dense<0.000000e+00> : vector<64x8xf32>
    %25 = tpu.matmul %24, %9, %cst_13 {dimension_numbers = #tpu.dot_dimension_numbers<[1], [0], [0], [1], [0, 0, 1, 1], [], []>} : vector<64x64xf32>, vector<64x8xf32>, vector<64x8xf32> -> vector<64x8xf32>
    %c0_14 = arith.constant 0 : index
    %c0_15 = arith.constant 0 : index
    %26 = vector.load %arg4[%c0_14, %c0_15] : memref<32x32xf32, #tpu.memory_space<vmem>>, vector<8x32xf32>
    %cst_16 = arith.constant dense<0.000000e+00> : vector<64x32xf32>
    %27 = tpu.matmul %25, %26, %cst_16 {dimension_numbers = #tpu.dot_dimension_numbers<[1], [0], [0], [1], [0, 0, 1, 1], [], []>} : vector<64x8xf32>, vector<8x32xf32>, vector<64x32xf32> -> vector<64x32xf32>
    %28 = vector.extract_strided_slice %6 {offsets = [0, 8], sizes = [64, 8], strides = [1, 1]} : vector<64x96xf32> to vector<64x8xf32>
    %29 = vector.extract_strided_slice %6 {offsets = [0, 40], sizes = [64, 8], strides = [1, 1]} : vector<64x96xf32> to vector<64x8xf32>
    %30 = vector.extract_strided_slice %6 {offsets = [0, 72], sizes = [64, 8], strides = [1, 1]} : vector<64x96xf32> to vector<64x8xf32>
    %cst_17 = arith.constant dense<0.000000e+00> : vector<64x64xf32>
    %31 = tpu.matmul %28, %29, %cst_17 {dimension_numbers = #tpu.dot_dimension_numbers<[1], [1], [0], [0], [0, 0, 1, 0], [], []>} : vector<64x8xf32>, vector<64x8xf32>, vector<64x64xf32> -> vector<64x64xf32>
    %cst_18 = arith.constant 0.353553385 : f32
    %32 = vector.broadcast %cst_18 : f32 to vector<64x64xf32>
    %33 = arith.mulf %31, %32 : vector<64x64xf32>
    %c1 = arith.constant 1 : index
    %c0_19 = arith.constant 0 : index
    %c0_20 = arith.constant 0 : index
    %34 = vector.load %arg6[%c1, %c0_19, %c0_20] : memref<4x64x64xf32, #tpu.memory_space<vmem>>, vector<1x64x64xf32>
    %35 = vector.shape_cast %34 : vector<1x64x64xf32> to vector<64x64xf32>
    %36 = arith.addf %33, %35 : vector<64x64xf32>
    %cst_21 = arith.constant dense<0xFF800000> : vector<64xf32>
    %37 = vector.multi_reduction <maximumf>, %36, %cst_21 [1] : vector<64x64xf32> to vector<64xf32>
    %38 = vector.shape_cast %37 : vector<64xf32> to vector<64x1xf32>
    %39 = vector.broadcast %38 : vector<64x1xf32> to vector<64x64xf32>
    %40 = arith.subf %36, %39 : vector<64x64xf32>
    %41 = math.exp %40 : vector<64x64xf32>
    %cst_22 = arith.constant dense<0.000000e+00> : vector<64xf32>
    %42 = vector.multi_reduction <add>, %41, %cst_22 [1] : vector<64x64xf32> to vector<64xf32>
    %43 = vector.shape_cast %42 : vector<64xf32> to vector<64x1xf32>
    %44 = vector.broadcast %43 : vector<64x1xf32> to vector<64x64xf32>
    %45 = arith.divf %41, %44 : vector<64x64xf32>
    %cst_23 = arith.constant dense<0.000000e+00> : vector<64x8xf32>
    %46 = tpu.matmul %45, %30, %cst_23 {dimension_numbers = #tpu.dot_dimension_numbers<[1], [0], [0], [1], [0, 0, 1, 1], [], []>} : vector<64x64xf32>, vector<64x8xf32>, vector<64x8xf32> -> vector<64x8xf32>
    %c8 = arith.constant 8 : index
    %c0_24 = arith.constant 0 : index
    %47 = vector.load %arg4[%c8, %c0_24] : memref<32x32xf32, #tpu.memory_space<vmem>>, vector<8x32xf32>
    %cst_25 = arith.constant dense<0.000000e+00> : vector<64x32xf32>
    %48 = tpu.matmul %46, %47, %cst_25 {dimension_numbers = #tpu.dot_dimension_numbers<[1], [0], [0], [1], [0, 0, 1, 1], [], []>} : vector<64x8xf32>, vector<8x32xf32>, vector<64x32xf32> -> vector<64x32xf32>
    %49 = arith.addf %27, %48 : vector<64x32xf32>
    %50 = vector.extract_strided_slice %6 {offsets = [0, 16], sizes = [64, 8], strides = [1, 1]} : vector<64x96xf32> to vector<64x8xf32>
    %51 = vector.extract_strided_slice %6 {offsets = [0, 48], sizes = [64, 8], strides = [1, 1]} : vector<64x96xf32> to vector<64x8xf32>
    %52 = vector.extract_strided_slice %6 {offsets = [0, 80], sizes = [64, 8], strides = [1, 1]} : vector<64x96xf32> to vector<64x8xf32>
    %cst_26 = arith.constant dense<0.000000e+00> : vector<64x64xf32>
    %53 = tpu.matmul %50, %51, %cst_26 {dimension_numbers = #tpu.dot_dimension_numbers<[1], [1], [0], [0], [0, 0, 1, 0], [], []>} : vector<64x8xf32>, vector<64x8xf32>, vector<64x64xf32> -> vector<64x64xf32>
    %cst_27 = arith.constant 0.353553385 : f32
    %54 = vector.broadcast %cst_27 : f32 to vector<64x64xf32>
    %55 = arith.mulf %53, %54 : vector<64x64xf32>
    %c2 = arith.constant 2 : index
    %c0_28 = arith.constant 0 : index
    %c0_29 = arith.constant 0 : index
    %56 = vector.load %arg6[%c2, %c0_28, %c0_29] : memref<4x64x64xf32, #tpu.memory_space<vmem>>, vector<1x64x64xf32>
    %57 = vector.shape_cast %56 : vector<1x64x64xf32> to vector<64x64xf32>
    %58 = arith.addf %55, %57 : vector<64x64xf32>
    %cst_30 = arith.constant dense<0xFF800000> : vector<64xf32>
    %59 = vector.multi_reduction <maximumf>, %58, %cst_30 [1] : vector<64x64xf32> to vector<64xf32>
    %60 = vector.shape_cast %59 : vector<64xf32> to vector<64x1xf32>
    %61 = vector.broadcast %60 : vector<64x1xf32> to vector<64x64xf32>
    %62 = arith.subf %58, %61 : vector<64x64xf32>
    %63 = math.exp %62 : vector<64x64xf32>
    %cst_31 = arith.constant dense<0.000000e+00> : vector<64xf32>
    %64 = vector.multi_reduction <add>, %63, %cst_31 [1] : vector<64x64xf32> to vector<64xf32>
    %65 = vector.shape_cast %64 : vector<64xf32> to vector<64x1xf32>
    %66 = vector.broadcast %65 : vector<64x1xf32> to vector<64x64xf32>
    %67 = arith.divf %63, %66 : vector<64x64xf32>
    %cst_32 = arith.constant dense<0.000000e+00> : vector<64x8xf32>
    %68 = tpu.matmul %67, %52, %cst_32 {dimension_numbers = #tpu.dot_dimension_numbers<[1], [0], [0], [1], [0, 0, 1, 1], [], []>} : vector<64x64xf32>, vector<64x8xf32>, vector<64x8xf32> -> vector<64x8xf32>
    %c16 = arith.constant 16 : index
    %c0_33 = arith.constant 0 : index
    %69 = vector.load %arg4[%c16, %c0_33] : memref<32x32xf32, #tpu.memory_space<vmem>>, vector<8x32xf32>
    %cst_34 = arith.constant dense<0.000000e+00> : vector<64x32xf32>
    %70 = tpu.matmul %68, %69, %cst_34 {dimension_numbers = #tpu.dot_dimension_numbers<[1], [0], [0], [1], [0, 0, 1, 1], [], []>} : vector<64x8xf32>, vector<8x32xf32>, vector<64x32xf32> -> vector<64x32xf32>
    %71 = arith.addf %49, %70 : vector<64x32xf32>
    %72 = vector.extract_strided_slice %6 {offsets = [0, 24], sizes = [64, 8], strides = [1, 1]} : vector<64x96xf32> to vector<64x8xf32>
    %73 = vector.extract_strided_slice %6 {offsets = [0, 56], sizes = [64, 8], strides = [1, 1]} : vector<64x96xf32> to vector<64x8xf32>
    %74 = vector.extract_strided_slice %6 {offsets = [0, 88], sizes = [64, 8], strides = [1, 1]} : vector<64x96xf32> to vector<64x8xf32>
    %cst_35 = arith.constant dense<0.000000e+00> : vector<64x64xf32>
    %75 = tpu.matmul %72, %73, %cst_35 {dimension_numbers = #tpu.dot_dimension_numbers<[1], [1], [0], [0], [0, 0, 1, 0], [], []>} : vector<64x8xf32>, vector<64x8xf32>, vector<64x64xf32> -> vector<64x64xf32>
    %cst_36 = arith.constant 0.353553385 : f32
    %76 = vector.broadcast %cst_36 : f32 to vector<64x64xf32>
    %77 = arith.mulf %75, %76 : vector<64x64xf32>
    %c3 = arith.constant 3 : index
    %c0_37 = arith.constant 0 : index
    %c0_38 = arith.constant 0 : index
    %78 = vector.load %arg6[%c3, %c0_37, %c0_38] : memref<4x64x64xf32, #tpu.memory_space<vmem>>, vector<1x64x64xf32>
    %79 = vector.shape_cast %78 : vector<1x64x64xf32> to vector<64x64xf32>
    %80 = arith.addf %77, %79 : vector<64x64xf32>
    %cst_39 = arith.constant dense<0xFF800000> : vector<64xf32>
    %81 = vector.multi_reduction <maximumf>, %80, %cst_39 [1] : vector<64x64xf32> to vector<64xf32>
    %82 = vector.shape_cast %81 : vector<64xf32> to vector<64x1xf32>
    %83 = vector.broadcast %82 : vector<64x1xf32> to vector<64x64xf32>
    %84 = arith.subf %80, %83 : vector<64x64xf32>
    %85 = math.exp %84 : vector<64x64xf32>
    %cst_40 = arith.constant dense<0.000000e+00> : vector<64xf32>
    %86 = vector.multi_reduction <add>, %85, %cst_40 [1] : vector<64x64xf32> to vector<64xf32>
    %87 = vector.shape_cast %86 : vector<64xf32> to vector<64x1xf32>
    %88 = vector.broadcast %87 : vector<64x1xf32> to vector<64x64xf32>
    %89 = arith.divf %85, %88 : vector<64x64xf32>
    %cst_41 = arith.constant dense<0.000000e+00> : vector<64x8xf32>
    %90 = tpu.matmul %89, %74, %cst_41 {dimension_numbers = #tpu.dot_dimension_numbers<[1], [0], [0], [1], [0, 0, 1, 1], [], []>} : vector<64x64xf32>, vector<64x8xf32>, vector<64x8xf32> -> vector<64x8xf32>
    %c24 = arith.constant 24 : index
    %c0_42 = arith.constant 0 : index
    %91 = vector.load %arg4[%c24, %c0_42] : memref<32x32xf32, #tpu.memory_space<vmem>>, vector<8x32xf32>
    %cst_43 = arith.constant dense<0.000000e+00> : vector<64x32xf32>
    %92 = tpu.matmul %90, %91, %cst_43 {dimension_numbers = #tpu.dot_dimension_numbers<[1], [0], [0], [1], [0, 0, 1, 1], [], []>} : vector<64x8xf32>, vector<8x32xf32>, vector<64x32xf32> -> vector<64x32xf32>
    %93 = arith.addf %71, %92 : vector<64x32xf32>
    %c0_44 = arith.constant 0 : index
    %c0_45 = arith.constant 0 : index
    %94 = vector.load %arg5[%c0_44, %c0_45] : memref<1x32xf32, #tpu.memory_space<vmem>>, vector<1x32xf32>
    %95 = vector.broadcast %94 : vector<1x32xf32> to vector<64x32xf32>
    %96 = arith.addf %93, %95 : vector<64x32xf32>
    %cst_46 = arith.constant dense<0.000000e+00> : vector<32xf32>
    %97 = vector.multi_reduction <add>, %96, %cst_46 [0] : vector<64x32xf32> to vector<32xf32>
    %98 = vector.shape_cast %97 : vector<32xf32> to vector<1x32xf32>
    %cst_47 = arith.constant 6.400000e+01 : f32
    %99 = vector.broadcast %cst_47 : f32 to vector<1x32xf32>
    %100 = arith.divf %98, %99 : vector<1x32xf32>
    %c0_48 = arith.constant 0 : index
    %c0_49 = arith.constant 0 : index
    %c0_50 = arith.constant 0 : index
    %101 = vector.load %arg7[%c0_48, %c0_49, %c0_50] : memref<1x1x32xf32, #tpu.memory_space<vmem>>, vector<1x1x32xf32>
    %102 = vector.shape_cast %101 : vector<1x1x32xf32> to vector<1x32xf32>
    %103 = vector.shape_cast %100 : vector<1x32xf32> to vector<1x1x32xf32>
    tpu.vector_store %arg7[%c0_48, %c0_49, %c0_50], %103 {strides = array<i32>} : memref<1x1x32xf32, #tpu.memory_space<vmem>>, vector<1x1x32xf32>,
    return
  }
  func.func @transform_0(%arg0: i32) -> (i32, i32, i32) {
    %c0_i32 = arith.constant 0 : i32
    %c0_i32_0 = arith.constant 0 : i32
    %c0_i32_1 = arith.constant 0 : i32
    return %arg0, %c0_i32, %c0_i32_0 : i32, i32, i32
  }
  func.func @transform_1(%arg0: i32) -> (i32, i32) {
    %c0_i32 = arith.constant 0 : i32
    %c0_i32_0 = arith.constant 0 : i32
    %c0_i32_1 = arith.constant 0 : i32
    return %c0_i32, %c0_i32_0 : i32, i32
  }
  func.func @transform_2(%arg0: i32) -> (i32, i32) {
    %c0_i32 = arith.constant 0 : i32
    %c0_i32_0 = arith.constant 0 : i32
    %c0_i32_1 = arith.constant 0 : i32
    return %c0_i32, %c0_i32_0 : i32, i32
  }
  func.func @transform_3(%arg0: i32) -> (i32, i32) {
    %c0_i32 = arith.constant 0 : i32
    %c0_i32_0 = arith.constant 0 : i32
    %c0_i32_1 = arith.constant 0 : i32
    return %c0_i32, %c0_i32_0 : i32, i32
  }
  func.func @transform_4(%arg0: i32) -> (i32, i32) {
    %c0_i32 = arith.constant 0 : i32
    %c0_i32_0 = arith.constant 0 : i32
    %c0_i32_1 = arith.constant 0 : i32
    return %c0_i32, %c0_i32_0 : i32, i32
  }
  func.func @transform_5(%arg0: i32) -> (i32, i32, i32) {
    %c0_i32 = arith.constant 0 : i32
    %c0_i32_0 = arith.constant 0 : i32
    %c0_i32_1 = arith.constant 0 : i32
    %c0_i32_2 = arith.constant 0 : i32
    return %c0_i32, %c0_i32_0, %c0_i32_1 : i32, i32, i32
  }
  func.func @transform_6(%arg0: i32) -> (i32, i32, i32) {
    %c0_i32 = arith.constant 0 : i32
    %c0_i32_0 = arith.constant 0 : i32
    %c0_i32_1 = arith.constant 0 : i32
    return %arg0, %c0_i32, %c0_i32_0 : i32, i32, i32
  }
}

</mosaic_0001>

<bundles_post_ra>
// kernel: sub.10
= control target key start
LH: loop header
LB: loop body
LE: loop exit
PB: predicated region body
PF: predicated region fallthrough
CT: control target
= control target key end

     0   :  { %s7_s6 = smov 3  ;;  %s21_s9 = smov 3  ;;  %vm4_vm0 = vcmask 64512   ;;  %vm11_vm1 = vcmask 523712   ;;  %vm18_vm2 = vcmask 458112   ;;  %vm25_vm3 = vcmask 392512   ;;  %s119_s0 = inlined_call_operand.vmem [shape: f32[8,8,2], index: 0, kind: input, shape index: {}]   ;;  %s120_s1 = inlined_call_operand.vmem [shape: f32[64,2], index: 1, kind: output, shape index: {}]  }
   0x1   :  { %v61_v0 = vld [vmem:[%s119_s0 + $0x7] ss:$8 sm:%s7_s6]   ;;  %s75_s10 = smov 56   ;;  %v63_v1 = vld [vmem:[%s119_s0 + $0x5] ss:$8 sm:%s21_s9]   ;;  %s14_s13 = smov 3 }
   0x2   :  { %9 = vrot.lane.b32.xlu0 %v61_v0, %s75_s10  ;;  %s76_s14 = smov 40   ;;  %v62_v2 = vld [vmem:[%s119_s0 + $0x6] ss:$8 sm:%s14_s13]   ;;  %s28_s17 = smov 3  ;;  %vm32_vm4 = vcmask 326912   ;;  %vm39_vm5 = vcmask 261312  }
   0x3   :  { %23 = vrot.lane.b32.xlu1 %v63_v1, %s76_s14  ;;  %v64_v3 = vld [vmem:[%s119_s0 + $0x4] ss:$8 sm:%s28_s17]   ;;  %s35_s20 = smov 3  ;;  %s42_s21 = smov 3  ;;  %vm46_vm6 = vcmask 195712   ;;  %vm53_vm7 = vcmask 130112  }
   0x4   :  { %s77_s22 = smov 48   ;;  %s78_s23 = smov 32   ;;  %v65_v4 = vld [vmem:[%s119_s0 + $0x3] ss:$8 sm:%s35_s20]   ;;  %v66_v5 = vld [vmem:[%s119_s0 + $0x2] ss:$8 sm:%s42_s21]  }
   0x5   :  { %s2_s26 = smov 3  ;;  %s49_s29 = smov 3 }
   0x6   :  { %16 = vrot.lane.b32.xlu0 %v62_v2, %s77_s22  ;;  %v3_v6 = vld [vmem:[%s119_s0] ss:$8 sm:%s2_s26]   ;;  %s79_s3 = smov 24   ;;  %s80_s4 = smov 16  }
   0x7   :  { %30 = vrot.lane.b32.xlu1 %v64_v3, %s78_s23  ;;  %5 = vst.msk [vmem:[#allocation0] sm:$0x3] %vm4_vm0, %v3_v6   ;;  %v67_v7 = vld [vmem:[%s119_s0 + $0x1] ss:$8 sm:%s49_s29]   ;;  %s81_s0 = smov 8  }
   0xa   :  { %37 = vrot.lane.b32.xlu0 %v65_v4, %s79_s3 }
   0xb   :  { %44 = vrot.lane.b32.xlu1 %v66_v5, %s80_s4 }
   0xe   :  { %51 = vrot.lane.b32.xlu0 %v67_v7, %s81_s0 }
  0x74   :  { %v10_v8 = vpop.permute.xlu0 %9  }
  0x75   :  { %12 = vst.msk [vmem:[#allocation0] sm:$0x3] %vm11_vm1, %v10_v8   ;;  %v24_v9 = vpop.permute.xlu1 %23  }
  0x78   :  { %v17_v10 = vpop.permute.xlu0 %16  }
  0x79   :  { %19 = vst.msk [vmem:[#allocation0] sm:$0x3] %vm18_vm2, %v17_v10   ;;  %v31_v11 = vpop.permute.xlu1 %30  }
  0x7a   :  { %26 = vst.msk [vmem:[#allocation0] sm:$0x3] %vm25_vm3, %v24_v9  }
  0x7b   :  { %33 = vst.msk [vmem:[#allocation0] sm:$0x3] %vm32_vm4, %v31_v11  }
  0x7c   :  { %v38_v12 = vpop.permute.xlu0 %37  }
  0x7d   :  { %40 = vst.msk [vmem:[#allocation0] sm:$0x3] %vm39_vm5, %v38_v12   ;;  %v45_v13 = vpop.permute.xlu1 %44  }
  0x7e   :  { %47 = vst.msk [vmem:[#allocation0] sm:$0x3] %vm46_vm6, %v45_v13  }
  0x80   :  { %v52_v14 = vpop.permute.xlu0 %51  }
  0x81   :  { %54 = vst.msk [vmem:[#allocation0] sm:$0x3] %vm53_vm7, %v52_v14  }
  0x88   :  { %v58_v15 = vld [vmem:[#allocation0] sm:$0x3] }
  0x89   :  { %60 = vst [vmem:[%s120_s1] sm:$0x3] %v58_v15 }

// kernel: self_attention_pooling.1
= control target key start
LH: loop header
LB: loop body
LE: loop exit
PB: predicated region body
PF: predicated region fallthrough
CT: control target
= control target key end

     0   :  { %11 = vsyncpa [#allocation3], 0  ;;  %s4923_s0 = inlined_call_operand.vmem [shape: f32[2,64,32], index: 0, kind: input, shape index: {}]   ;;  %s4924_s1 = inlined_call_operand.vmem [shape: f32[32,96], index: 1, kind: input, shape index: {}]   ;;  %s4925_s2 = inlined_call_operand.vmem [shape: f32[1,96], index: 2, kind: input, shape index: {}]   ;;  %s4926_s3 = inlined_call_operand.vmem [shape: f32[32,32], index: 3, kind: input, shape index: {}]   ;;  %s4927_s4 = inlined_call_operand.vmem [shape: f32[1,32], index: 4, kind: input, shape index: {}]   ;;  %s4928_s5 = inlined_call_operand.vmem [shape: f32[4,64,64], index: 5, kind: input, shape index: {}]   ;;  %s4929_s6 = inlined_call_operand.hbm [shape: f32[2,1,32], index: 6, kind: output, shape index: {}]  }
   0x1   :  { %13 = vsyncpa [#allocation3 + $0x1], 0  ;;  %s4072_s21 = smov 0   ;;  %s4074_s22 = smov 0  }
   0x2   :  { %s4076_s23 = smov 0   ;;  %s4078_s24 = smov 0  }
   0x3 LB: > { %s4093_s25 = sadd.s32 4294967295, %s4023_s24   ;;  %s2775_s26 = sadd.s32 4294967294, %s4023_s24   ;;  %s4023_s24 = sphi %s4078_s24, %s4937_s24   ;;  %s4019_s23 = sphi %s4076_s23, %s4936_s23   ;;  %s4015_s22 = sphi %s4074_s22, %s4935_s22   ;;  %s4011_s21 = sphi %s4072_s21, %s4934_s21  }
   0x4   : > { %s4097_s27 = sadd.s32 1, %s4023_s24   ;;  %s157_s28 = sadd.s32 1, %s4019_s23 }
   0x5   : > { %s154_s29 = ssub.s32 %s4023_s24, %s4097_s27  ;;  %p167_p0 = scmp.ne.s32.totalorder %s4019_s23, %s4015_s22 }
   0x6   : > { %p155_p1 = scmp.eq.s32.totalorder %s154_s29, 0  ;;  %p168_p2 = scmp.eq.s32.totalorder %s4093_s25, 1 }
   0x7   : > { %p173_p3 = scmp.ne.s32.totalorder %s4015_s22, %s4011_s21  ;;  %p174_p4 = scmp.eq.s32.totalorder %s2775_s26, 1 }
   0x8   : > { %s4108_s30 = scalar_select %p155_p1, %s4019_s23, %s157_s28  }
   0x9   : > { %p4110_p5 = por %p168_p2, %p167_p0  ;;  %p4114_p6 = por %p174_p4, %p173_p3 }
   0xa   : > { %p2778_p7 = scmp.ge.s32.totalorder %s4023_s24, 1  ;;  %p215_p8 = scmp.lt.s32.totalorder %s4023_s24, 3 }
   0xc   : > { %p216_p9 = pnand %p2778_p7, %p215_p8 }
   0xd   : > { %v257_v0 = vld [vmem:[%s4924_s1] sm:$0xff] (!%p216_p9)  ;;  %v258_v1 = vld [vmem:[%s4924_s1 + $0x8] sm:$0xff] (!%p216_p9)  ;;  %v259_v2 = vld [vmem:[%s4924_s1 + $0x10] sm:$0xff] (!%p216_p9)  ;;  %p244_p10 = scmp.lt.s32.totalorder (!%p216_p9), %s4093_s25, 1  ;;  %vm268_vm0 = vcmask (!%p216_p9), 261120   ;;  %vm422_vm1 = vcmask (!%p216_p9), 64512  }
   0xe   : > { %219 = sbr.rel (%p216_p9) target bundleno = 2652 (0xa5c), region = 44  ;;  %v3423_v3 = vpack.c.bf16 (!%p216_p9), %v258_v1, %v257_v0  ;;  %v260_v4 = vld [vmem:[%s4924_s1 + $0x18] sm:$0xff] (!%p216_p9)  ;;  %v2781_v14 = vld [vmem:[%s4925_s2] ss:$0 sm:$0xff] (!%p216_p9)  ;;  %s4025_s9 = smov (!%p216_p9), 96   ;;  %vm4188_vm2 = vmpackc.low (!%p216_p9), %vm422_vm1, %vm422_vm1  ;;  %vm584_vm3 = vcmask (!%p216_p9), 523264  }
   0xf   : > { %v3427_v5 = vpack.c.bf16 (!%p216_p9), %v260_v4, %v259_v2  ;;  %v569_v53 = vld [vmem:[%s4928_s5 + $0x8] sm:$0xff] (!%p216_p9)  ;;  %v568_v56 = vld [vmem:[%s4928_s5] sm:$0xff] (!%p216_p9)  ;;  %v571_v61 = vld [vmem:[%s4928_s5 + $0x18] sm:$0xff] (!%p216_p9)  ;;  %s4026_s28 = smov (!%p216_p9), 64   ;;  %s4027_s12 = smov (!%p216_p9), 88   ;;  %vm2705_vm4 = vcmask (!%p216_p9), 253952  }
  0x10   : > { %3424 = vmatprep.subr.bf16.mxu0 (!%p216_p9), %v3423_v3  ;;  %v570_v4 = vld [vmem:[%s4928_s5 + $0x10] sm:$0xff] (!%p216_p9)  ;;  %s4028_s13 = smov (!%p216_p9), 120   ;;  %s4029_s14 = smov (!%p216_p9), 80  }
  0x11   : > { %3426 = vmatpush3.bf16.msra.mxu0 (!%p216_p9), %v3423_v3  ;;  %s4030_s15 = smov (!%p216_p9), 112   ;;  %s4033_s19 = smov (!%p216_p9), 104  }
  0x12   : > { %3428 = vmatprep.subr.bf16.mxu0 (!%p216_p9), %v3427_v5  ;;  %s2943_s20 = sshll.u32 (!%p216_p9), %s4093_s25, 4 }
  0x13   : > { %s4881_s10 = scalar_lea.hbm (!%p216_p9), %s4929_s6, %s2943_s20 }
  0x15   : > { %s245_s17 = scalar_select %p244_p10, %s4093_s25, 1  ;;  %3430 = vmatpush3.bf16.msra.mxu0 %v3427_v5 }
  0x16   : > { %s4036_s25 = smov [#allocation2]  }
  0x17   : > { %s2946_s18 = sshll.u32 %s245_s17, 6  ;;  %s4031_s17 = smov 56  }
  0x18   : > { %s248_s26 = scalar_lea.vmem %s4923_s0, %s2946_s18  ;;  %s4032_s18 = smov 72  }
  0x19   : > { %v249_v6 = vld [vmem:[%s248_s26] sm:$0xff]  ;;  %v250_v7 = vld [vmem:[%s248_s26 + $0x8] sm:$0xff]  ;;  %v251_v8 = vld [vmem:[%s248_s26 + $0x10] sm:$0xff] }
  0x1a   : > { %3131 = vmatprep.mubr.msk.f32.mxu0 %vm268_vm0, %v249_v6  ;;  %v252_v9 = vld [vmem:[%s248_s26 + $0x18] sm:$0xff]  ;;  %v253_v10 = vld [vmem:[%s248_s26 + $0x20] sm:$0xff]  ;;  %v254_v11 = vld [vmem:[%s248_s26 + $0x28] sm:$0xff] }
  0x1b   : > { %3132 = vmatmul.mubr.msk.f32.vlgmr.msra.gmra.mrb[0].mxu0 %vm268_vm0, %v250_v7  ;;  %v255_v12 = vld [vmem:[%s248_s26 + $0x30] sm:$0xff]  ;;  %v256_v13 = vld [vmem:[%s248_s26 + $0x38] sm:$0xff]  ;;  %s4034_s26 = smov 48  }
  0x1c   : > { %3134 = vmatprep.mubr.msk.f32.mxu0 %vm268_vm0, %v251_v8 }
  0x1f   : > { %3135 = vmatmul.mubr.msk.f32.gmra.mrb[2].mxu0 %vm268_vm0, %v252_v9 }
  0x20   : > { %3137 = vmatprep.mubr.msk.f32.mxu0 %vm268_vm0, %v253_v10  ;;  %v573_v10 = vld [vmem:[%s4928_s5 + $0x28] sm:$0xff] }
  0x23   : > { %3138 = vmatmul.mubr.msk.f32.gmra.mrb[4].mxu0 %vm268_vm0, %v254_v11 }
  0x24   : > { %3140 = vmatprep.mubr.msk.f32.mxu0 %vm268_vm0, %v255_v12 }
  0x27   : > { %3141 = vmatmul.mubr.msk.f32.gmra.mrb[6].mxu0 %vm268_vm0, %v256_v13 }
  0xee   : > { %v3133_v15 = vpop.f32.mrb[0].mxu0 }
  0xef   : > { %v4148_v16 = vadd.f32 %v3133_v15, %v2781_v14  ;;  %v359_v17 = vpop.f32.mrb[1].mxu0 }
  0xf0   : > { %v4150_v18 = vadd.f32 %v2781_v14, %v359_v17  ;;  %v575_v17 = vld [vmem:[%s4928_s5 + $0x38] sm:$0xff] }
  0xf2   : > { %3159 = vmatprep.mubr.msk.f32.mxu1 %vm422_vm1, %v4150_v18  ;;  %v4156_v19 = vpack.i.bf16 %v4148_v16, %v4150_v18  ;;  %v3136_v20 = vpop.f32.mrb[2].mxu0 }
  0xf3   : > { %v4158_v21 = vadd.f32 %v3136_v20, %v2781_v14  ;;  %v369_v22 = vpop.f32.mrb[3].mxu0 }
  0xf4   : > { %3674 = vrot.lane.b32.xlu0 %v4156_v19, %s4025_s9  ;;  %v4161_v23 = vadd.f32 %v2781_v14, %v369_v22 }
  0xf6   : > { %v4165_v24 = vpack.i.bf16 %v4158_v21, %v4161_v23  ;;  %v3139_v25 = vpop.f32.mrb[4].mxu0 }
  0xf7   : > { %v4167_v26 = vadd.f32 %v3139_v25, %v2781_v14  ;;  %v379_v27 = vpop.f32.mrb[5].mxu0 }
  0xf8   : > { %3679 = vrot.lane.b32.xlu0 %v4165_v24, %s4025_s9  ;;  %v4170_v28 = vadd.f32 %v2781_v14, %v379_v27 }
  0xfa   : > { %v4174_v29 = vpack.i.bf16 %v4167_v26, %v4170_v28  ;;  %v3142_v30 = vpop.f32.mrb[6].mxu0 }
  0xfb   : > { %v4176_v31 = vadd.f32 %v3142_v30, %v2781_v14  ;;  %v389_v32 = vpop.f32.mrb[7].mxu0  ;;  %v572_v30 = vld [vmem:[%s4928_s5 + $0x20] sm:$0xff] }
  0xfc   : > { %3684 = vrot.lane.b32.xlu1 %v4174_v29, %s4025_s9  ;;  %v4179_v33 = vadd.f32 %v2781_v14, %v389_v32 }
  0xfe   : > { %v4183_v34 = vpack.i.bf16 %v4176_v31, %v4179_v33 }
 0x100   : > { %3689 = vrot.lane.b32.xlu1 %v4183_v34, %s4025_s9 }
 0x166   : > { %v3675_v35 = vpop.permute.xlu0 %3674 }
 0x167   : > { %v3677_v36 = vunpack.i.h.bf16 %v3675_v35  ;;  %v3676_v37 = vunpack.i.l.bf16 %v3675_v35 }
 0x169   : > { %v3431_v39 = vpack.c.bf16 %v3677_v36, %v3676_v37  ;;  %v574_v37 = vld [vmem:[%s4928_s5 + $0x30] sm:$0xff] }
 0x16a   : > { %v3680_v40 = vpop.permute.xlu0 %3679 }
 0x16b   : > { %3433 = vmatprep.subr.msk.bf16.mxu1 %vm4188_vm2, %v3431_v39  ;;  %v3682_v41 = vunpack.i.h.bf16 %v3680_v40  ;;  %v3681_v42 = vunpack.i.l.bf16 %v3680_v40 }
 0x16c   : > { %3436 = vmatpush3.bf16.xpose.msk.msra.mxu1 %vm4188_vm2, %v3431_v39 }
 0x16d   : > { %v3437_v43 = vpack.c.bf16 %v3682_v41, %v3681_v42 }
 0x16e   : > { %v3685_v44 = vpop.permute.xlu1 %3684 }
 0x16f   : > { %3439 = vmatprep.subr.msk.bf16.mxu1 %vm4188_vm2, %v3437_v43  ;;  %v3687_v45 = vunpack.i.h.bf16 %v3685_v44  ;;  %v3686_v46 = vunpack.i.l.bf16 %v3685_v44 }
 0x171   : > { %v3443_v47 = vpack.c.bf16 %v3687_v45, %v3686_v46 }
 0x172   : > { %v3690_v48 = vpop.permute.xlu1 %3689 }
 0x173   : > { %v3692_v49 = vunpack.i.h.bf16 %v3690_v48  ;;  %v3691_v50 = vunpack.i.l.bf16 %v3690_v48 }
 0x174   : > { %3442 = vmatpush3.bf16.xpose.msk.msra.mxu1 %vm4188_vm2, %v3437_v43 }
 0x175   : > { %3445 = vmatprep.subr.msk.bf16.mxu1 %vm4188_vm2, %v3443_v47  ;;  %v3449_v51 = vpack.c.bf16 %v3692_v49, %v3691_v50 }
 0x17c   : > { %3448 = vmatpush3.bf16.xpose.msk.msra.mxu1 %vm4188_vm2, %v3443_v47 }
 0x17d   : > { %3451 = vmatprep.subr.msk.bf16.mxu1 %vm4188_vm2, %v3449_v51 }
 0x184   : > { %3454 = vmatpush3.bf16.xpose.msk.msra.mxu1 %vm4188_vm2, %v3449_v51 }
 0x18b   : > { %3160 = vmatmul.mubr.msk.f32.vlgmr.msra.gmra.mrb[0].mxu1 %vm422_vm1, %v4148_v16 }
 0x18c   : > { %3162 = vmatprep.mubr.msk.f32.mxu1 %vm422_vm1, %v4161_v23 }
 0x18f   : > { %3163 = vmatmul.mubr.msk.f32.gmra.mrb[2].mxu1 %vm422_vm1, %v4158_v21 }
 0x190   : > { %3165 = vmatprep.mubr.msk.f32.mxu1 %vm422_vm1, %v4170_v28 }
 0x193   : > { %3166 = vmatmul.mubr.msk.f32.gmra.mrb[4].mxu1 %vm422_vm1, %v4167_v26 }
 0x194   : > { %3168 = vmatprep.mubr.msk.f32.mxu1 %vm422_vm1, %v4179_v33 }
 0x197   : > { %3169 = vmatmul.mubr.msk.f32.gmra.mrb[6].mxu1 %vm422_vm1, %v4176_v31 }
 0x25e   : > { %v3161_v52 = vpop.f32.mrb[0].mxu1 }
 0x25f   : > { %v561_v54 = vmul.f32 0.35355338, %v3161_v52  ;;  %v521_v55 = vpop.f32.mrb[1].mxu1 }
 0x260   : > { %v560_v57 = vmul.f32 0.35355338, %v521_v55 }
 0x261   : > { %v577_v58 = vadd.f32 %v569_v53, %v561_v54 }
 0x262   : > { %v3164_v59 = vpop.f32.mrb[2].mxu1  ;;  %v576_v60 = vadd.f32 %v568_v56, %v560_v57 }
 0x263   : > { %v563_v62 = vmul.f32 0.35355338, %v3164_v59  ;;  %v531_v63 = vpop.f32.mrb[3].mxu1  ;;  %v588_v0 = vsel %vm584_vm3, %v577_v58, -inf }
 0x264   : > { %v562_v1 = vmul.f32 0.35355338, %v531_v63  ;;  %589 = vmax.xlane.f32.xlu1 %v588_v0  ;;  %v585_v2 = vsel %vm584_vm3, %v576_v60, -inf }
 0x265   : > { %586 = vmax.xlane.f32.xlu0 %v585_v2  ;;  %v4233_v3 = vadd.f32 %v571_v61, %v563_v62 }
 0x266   : > { %v3167_v5 = vpop.f32.mrb[4].mxu1  ;;  %v578_v9 = vadd.f32 %v570_v4, %v562_v1 }
 0x267   : > { %v541_v6 = vpop.f32.mrb[5].mxu1  ;;  %v594_v7 = vsel %vm584_vm3, %v4233_v3, -inf  ;;  %v565_v8 = vmul.f32 0.35355338, %v3167_v5 }
 0x268   : > { %v591_v14 = vsel %vm584_vm3, %v578_v9, -inf  ;;  %v564_v27 = vmul.f32 0.35355338, %v541_v6 }
 0x269   : > { %595 = vmax.xlane.f32.xlu0 %v594_v7  ;;  %v581_v15 = vadd.f32 %v573_v10, %v565_v8 }
 0x26a   : > { %v3170_v11 = vpop.f32.mrb[6].mxu1  ;;  %v580_v32 = vadd.f32 %v572_v30, %v564_v27 }
 0x26b   : > { %v551_v12 = vpop.f32.mrb[7].mxu1  ;;  %v567_v13 = vmul.f32 0.35355338, %v3170_v11  ;;  %v600_v20 = vsel %vm584_vm3, %v581_v15, -inf }
 0x26c   : > { %v597_v35 = vsel %vm584_vm3, %v580_v32, -inf  ;;  %v566_v36 = vmul.f32 0.35355338, %v551_v12 }
 0x26d   : > { %592 = vmax.xlane.f32.xlu0 %v591_v14  ;;  %v4248_v22 = vadd.f32 %v575_v17, %v567_v13 }
 0x26e   : > { %v4262_v39 = vadd.f32 %v574_v37, %v566_v36 }
 0x26f   : > { %v606_v25 = vsel %vm584_vm3, %v4248_v22, -inf }
 0x270   : > { %v603_v40 = vsel %vm584_vm3, %v4262_v39, -inf }
 0x271   : > { %601 = vmax.xlane.f32.xlu0 %v600_v20 }
 0x275   : > { %3694 = vrot.lane.b32.xlu1 %v4156_v19, %s4026_s28  ;;  %607 = vmax.xlane.f32.xlu0 %v606_v25 }
 0x28b   : > { %3699 = vrot.lane.b32.xlu0 %v4165_v24, %s4026_s28 }
 0x299   : > { %598 = vmax.xlane.f32.xlu1 %v597_v35 }
 0x2aa   : > { %3704 = vrot.lane.b32.xlu1 %v4174_v29, %s4026_s28 }
 0x2ce   : > { %604 = vmax.xlane.f32.xlu1 %v603_v40 }
 0x2df   : > { %3709 = vrot.lane.b32.xlu1 %v4183_v34, %s4026_s28 }
 0x2f1   : > { %v590_v41 = vpop.xlane.xlu1 %589 }
 0x2f2   : > { %v610_v42 = vsub.f32 %v577_v58, %v590_v41  ;;  %v587_v43 = vpop.xlane.xlu0 %586 }
 0x2f3   : > { %v609_v44 = vsub.f32 %v576_v60, %v587_v43 }
 0x2f4   : > { %v619_v45 = vmul.f32 1.442695, %v610_v42 }
 0x2f5   : > { %v617_v46 = vmul.f32 1.442695, %v609_v44  ;;  %v3695_v47 = vpop.permute.xlu1 %3694 }
 0x2f6   : > { %3833 = vpow2.f32 %v619_v45  ;;  %v3697_v48 = vunpack.i.h.bf16 %v3695_v47  ;;  %v3696_v49 = vunpack.i.l.bf16 %v3695_v47  ;;  %v596_v50 = vpop.xlane.xlu0 %595 }
 0x2f7   : > { %3835 = vpow2.f32 %v617_v46  ;;  %v612_v8 = vsub.f32 %v4233_v3, %v596_v50 }
 0x2f8   : > { %v3455_v51 = vpack.c.bf16 %v3697_v48, %v3696_v49 }
 0x2f9   : > { %v623_v10 = vmul.f32 1.442695, %v612_v8 }
 0x2fa   : > { %3456 = vmatprep.subr.bf16.mxu0 %v3455_v51  ;;  %v593_v52 = vpop.xlane.xlu0 %592 }
 0x2fb   : > { %v611_v53 = vsub.f32 %v578_v9, %v593_v52  ;;  %3458 = vmatpush3.bf16.msra.mxu0 %v3455_v51 }
 0x2fd   : > { %v621_v54 = vmul.f32 1.442695, %v611_v53 }
 0x2fe   : > { %v602_v55 = vpop.xlane.xlu0 %601 }
 0x2ff   : > { %3837 = vpow2.f32 %v621_v54  ;;  %v614_v56 = vsub.f32 %v581_v15, %v602_v55 }
 0x300   : > { %v4267_v57 = vpop.eup %3833 }
 0x301   : > { %v4269_v58 = vpop.eup %3835  ;;  %v627_v59 = vmul.f32 1.442695, %v614_v56  ;;  %v636_v60 = vsel %vm584_vm3, %v4267_v57, 0.0 }
 0x302   : > { %637 = vadd.xlane.f32.xlu0 %v636_v60  ;;  %v608_v61 = vpop.xlane.xlu0 %607  ;;  %v633_v62 = vsel %vm584_vm3, %v4269_v58, 0.0 }
 0x303   : > { %3839 = vpow2.f32 %v627_v59  ;;  %634 = vadd.xlane.f32.xlu1 %v633_v62  ;;  %v616_v9 = vsub.f32 %v4248_v22, %v608_v61 }
 0x304   : > { %3841 = vpow2.f32 %v623_v10 }
 0x305   : > { %v631_v13 = vmul.f32 1.442695, %v616_v9 }
 0x306   : > { %v3700_v63 = vpop.permute.xlu0 %3699 }
 0x307   : > { %v3702_v0 = vunpack.i.h.bf16 %v3700_v63  ;;  %v3701_v1 = vunpack.i.l.bf16 %v3700_v63 }
 0x309   : > { %v4275_v2 = vpop.eup %3837  ;;  %v3459_v4 = vpack.c.bf16 %v3702_v0, %v3701_v1 }
 0x30a   : > { %v639_v5 = vsel %vm584_vm3, %v4275_v2, 0.0 }
 0x30b   : > { %640 = vadd.xlane.f32.xlu0 %v639_v5  ;;  %3460 = vmatprep.subr.bf16.mxu0 %v3459_v4 }
 0x30c   : > { %3462 = vmatpush3.bf16.msra.mxu0 %v3459_v4 }
 0x30d   : > { %v4279_v6 = vpop.eup %3839 }
 0x30e   : > { %v648_v7 = vsel %vm584_vm3, %v4279_v6, 0.0  ;;  %v4287_v27 = vpop.eup %3841 }
 0x30f   : > { %649 = vadd.xlane.f32.xlu0 %v648_v7 }
 0x314   : > { %3714 = vrot.lane.b32.xlu1 %v4156_v19, %s4027_s12 }
 0x326   : > { %v599_v11 = vpop.xlane.xlu1 %598 }
 0x327   : > { %v613_v12 = vsub.f32 %v580_v32, %v599_v11  ;;  %v642_v32 = vsel %vm584_vm3, %v4287_v27, 0.0 }
 0x329   : > { %v625_v14 = vmul.f32 1.442695, %v613_v12 }
 0x32a   : > { %v3705_v15 = vpop.permute.xlu1 %3704 }
 0x32b   : > { %3843 = vpow2.f32 %v625_v14  ;;  %v3707_v17 = vunpack.i.h.bf16 %v3705_v15  ;;  %v3706_v20 = vunpack.i.l.bf16 %v3705_v15 }
 0x32c   : > { %3845 = vpow2.f32 %v631_v13 }
 0x32d   : > { %v3463_v25 = vpack.c.bf16 %v3707_v17, %v3706_v20 }
 0x32f   : > { %3464 = vmatprep.subr.bf16.mxu0 %v3463_v25 }
 0x330   : > { %3466 = vmatpush3.bf16.msra.mxu0 %v3463_v25 }
 0x335   : > { %v4289_v30 = vpop.eup %3843 }
 0x336   : > { %v645_v3 = vsel %vm584_vm3, %v4289_v30, 0.0  ;;  %v4293_v22 = vpop.eup %3845 }
 0x337   : > { %646 = vadd.xlane.f32.xlu0 %v645_v3  ;;  %v654_v35 = vsel %vm584_vm3, %v4293_v22, 0.0 }
 0x338   : > { %643 = vadd.xlane.f32.xlu1 %v642_v32 }
 0x33b   : > { %655 = vadd.xlane.f32.xlu0 %v654_v35 }
 0x349   : > { %3724 = vrot.lane.b32.xlu1 %v4174_v29, %s4027_s12 }
 0x34d   : > { %3729 = vrot.lane.b32.xlu1 %v4183_v34, %s4027_s12 }
 0x351   : > { %827 = vrot.lane.b32.xlu1 %v4150_v18, %s4028_s13 }
 0x355   : > { %829 = vrot.lane.b32.xlu1 %v4148_v16, %s4028_s13 }
 0x359   : > { %833 = vrot.lane.b32.xlu1 %v4158_v21, %s4028_s13 }
 0x35b   : > { %v605_v36 = vpop.xlane.xlu1 %604 }
 0x35c   : > { %v615_v37 = vsub.f32 %v4262_v39, %v605_v36 }
 0x35d   : > { %837 = vrot.lane.b32.xlu1 %v4167_v26, %s4028_s13 }
 0x35e   : > { %v629_v40 = vmul.f32 1.442695, %v615_v37 }
 0x35f   : > { %v3710_v41 = vpop.permute.xlu1 %3709 }
 0x360   : > { %3847 = vpow2.f32 %v629_v40  ;;  %v3712_v42 = vunpack.i.h.bf16 %v3710_v41  ;;  %v3711_v43 = vunpack.i.l.bf16 %v3710_v41 }
 0x361   : > { %841 = vrot.lane.b32.xlu1 %v4176_v31, %s4028_s13 }
 0x362   : > { %v3467_v44 = vpack.c.bf16 %v3712_v42, %v3711_v43 }
 0x364   : > { %3468 = vmatprep.subr.bf16.mxu0 %v3467_v44 }
 0x365   : > { %3739 = vrot.lane.b32.xlu1 %v4165_v24, %s4029_s14  ;;  %3470 = vmatpush3.bf16.msra.mxu0 %v3467_v44 }
 0x369   : > { %3749 = vrot.lane.b32.xlu1 %v4183_v34, %s4029_s14 }
 0x36a   : > { %v4311_v45 = vpop.eup %3847 }
 0x36b   : > { %v651_v39 = vsel %vm584_vm3, %v4311_v45, 0.0 }
 0x36c   : > { %652 = vadd.xlane.f32.xlu0 %v651_v39 }
 0x36d   : > { %1523 = vrot.lane.b32.xlu1 %v4148_v16, %s4030_s15 }
 0x371   : > { %1527 = vrot.lane.b32.xlu1 %v4158_v21, %s4030_s15 }
 0x375   : > { %1531 = vrot.lane.b32.xlu1 %v4167_v26, %s4030_s15 }
 0x379   : > { %1535 = vrot.lane.b32.xlu1 %v4176_v31, %s4030_s15 }
 0x382   : > { %3719 = vrot.lane.b32.xlu0 %v4165_v24, %s4027_s12  ;;  %s4035_s12 = smov 40  }
 0x386   : > { %831 = vrot.lane.b32.xlu0 %v4161_v23, %s4028_s13 }
 0x38a   : > { %835 = vrot.lane.b32.xlu0 %v4170_v28, %s4028_s13 }
 0x38e   : > { %839 = vrot.lane.b32.xlu0 %v4179_v33, %s4028_s13  ;;  %s3965_s13 = sshll.u32 %s4036_s25, 4  ;;  %s3966_s13 = int_to_ptr.vmem [resolvable:$false] %s3965_s13 }
 0x38f   : > { %v638_v46 = vpop.xlane.xlu0 %637 }
 0x390   : > { %3849 = vrcp.f32 %v638_v46  ;;  %v635_v47 = vpop.xlane.xlu1 %634 }
 0x391   : > { %3851 = vrcp.f32 %v635_v47 }
 0x392   : > { %3734 = vrot.lane.b32.xlu0 %v4156_v19, %s4029_s14 }
 0x394   : > { %v3715_v48 = vpop.permute.xlu1 %3714 }
 0x395   : > { %v3717_v49 = vunpack.i.h.bf16 %v3715_v48  ;;  %v3716_v50 = vunpack.i.l.bf16 %v3715_v48 }
 0x396   : > { %3744 = vrot.lane.b32.xlu0 %v4174_v29, %s4029_s14  ;;  %s3967_s14 = scalar_lea.vmem %s3966_s13, 32 }
 0x397   : > { %v3471_v51 = vpack.c.bf16 %v3717_v49, %v3716_v50 }
 0x398   : > { %v641_v52 = vpop.xlane.xlu0 %640 }
 0x399   : > { %3853 = vrcp.f32 %v641_v52  ;;  %3473 = vmatprep.subr.msk.bf16.mxu0 %vm4188_vm2, %v3471_v51 }
 0x39a   : > { %v3850_v53 = vpop.eup %3849  ;;  %1521 = vrot.lane.b32.xlu0 %v4150_v18, %s4030_s15 }
 0x39b   : > { %v3852_v54 = vpop.eup %3851  ;;  %v660_v56 = vmul.f32 %v3850_v53, %v4267_v57 }
 0x39c   : > { %v658_v55 = vmul.f32 %v3852_v54, %v4269_v58  ;;  %v650_v57 = vpop.xlane.xlu0 %649 }
 0x39e   : > { %1525 = vrot.lane.b32.xlu0 %v4161_v23, %s4030_s15  ;;  %3187 = vmatprep.mubr.msk.f32.mxu0 %vm584_vm3, %v658_v55 }
 0x39f   : > { %3188 = vmatmul.mubr.msk.f32.vlgmr.msra.gmra.mrb[8].mxu0 %vm584_vm3, %v660_v56 }
 0x3a0   : > { %3476 = vmatpush3.bf16.xpose.msk.msra.mxu0 %vm4188_vm2, %v3471_v51 }
 0x3a2   : > { %1529 = vrot.lane.b32.xlu0 %v4170_v28, %s4030_s15 }
 0x3a3   : > { %v3854_v59 = vpop.eup %3853 }
 0x3a4   : > { %v662_v60 = vmul.f32 %v3854_v59, %v4275_v2 }
 0x3a6   : > { %1533 = vrot.lane.b32.xlu0 %v4179_v33, %s4030_s15  ;;  %3190 = vmatprep.mubr.msk.f32.mxu0 %vm584_vm3, %v662_v60 }
 0x3c4   : > { %v647_v58 = vpop.xlane.xlu0 %646 }
 0x3c5   : > { %3855 = vrcp.f32 %v647_v58  ;;  %v644_v61 = vpop.xlane.xlu1 %643 }
 0x3c6   : > { %3857 = vrcp.f32 %v644_v61 }
 0x3c7   : > { %3859 = vrcp.f32 %v650_v57 }
 0x3c8   : > { %v656_v8 = vpop.xlane.xlu0 %655 }
 0x3c9   : > { %v3725_v5 = vpop.permute.xlu1 %3724  ;;  %3861 = vrcp.f32 %v656_v8 }
 0x3ca   : > { %v3727_v13 = vunpack.i.h.bf16 %v3725_v5  ;;  %v3726_v14 = vunpack.i.l.bf16 %v3725_v5 }
 0x3cd   : > { %v3730_v7 = vpop.permute.xlu1 %3729 }
 0x3ce   : > { %v3732_v36 = vunpack.i.h.bf16 %v3730_v7  ;;  %v3731_v37 = vunpack.i.l.bf16 %v3730_v7 }
 0x3cf   : > { %v3856_v62 = vpop.eup %3855 }
 0x3d0   : > { %v3858_v63 = vpop.eup %3857  ;;  %v666_v4 = vmul.f32 %v3856_v62, %v4289_v30  ;;  %v3483_v30 = vpack.c.bf16 %v3727_v13, %v3726_v14  ;;  %v3489_v43 = vpack.c.bf16 %v3732_v36, %v3731_v37  ;;  %v2831_v14 = vld [vmem:[%s4928_s5 + $0x48] sm:$0xff]  ;;  %v2832_v36 = vld [vmem:[%s4928_s5 + $0x50] sm:$0xff] }
 0x3d1   : > { %v664_v0 = vmul.f32 %v3858_v63, %v4287_v27  ;;  %v3860_v1 = vpop.eup %3859  ;;  %v828_v9 = vpop.permute.xlu1 %827 }
 0x3d2   : > { %v668_v2 = vmul.f32 %v3860_v1, %v4279_v6 }
 0x3d3   : > { %3191 = vmatmul.mubr.msk.f32.gmra.mrb[10].mxu0 %vm584_vm3, %v664_v0  ;;  %v3862_v6 = vpop.eup %3861 }
 0x3d4   : > { %3193 = vmatprep.mubr.msk.f32.mxu0 %vm584_vm3, %v666_v4  ;;  %v672_v40 = vmul.f32 %v3862_v6, %v4293_v22 }
 0x3d5   : > { %v830_v11 = vpop.permute.xlu1 %829 }
 0x3d7   : > { %3194 = vmatmul.mubr.msk.f32.gmra.mrb[12].mxu0 %vm584_vm3, %v668_v2 }
 0x3d9   : > { %v834_v25 = vpop.permute.xlu1 %833 }
 0x3dd   : > { %v838_v41 = vpop.permute.xlu1 %837 }
 0x3e1   : > { %v842_v44 = vpop.permute.xlu1 %841 }
 0x3e5   : > { %v3740_v47 = vpop.permute.xlu1 %3739 }
 0x3e6   : > { %v3742_v48 = vunpack.i.h.bf16 %v3740_v47  ;;  %v3741_v49 = vunpack.i.l.bf16 %v3740_v47 }
 0x3e8   : > { %v3517_v50 = vpack.c.bf16 %v3742_v48, %v3741_v49  ;;  %v2835_v48 = vld [vmem:[%s4928_s5 + $0x68] sm:$0xff] }
 0x3e9   : > { %v3750_v55 = vpop.permute.xlu1 %3749 }
 0x3ea   : > { %v3752_v56 = vunpack.i.h.bf16 %v3750_v55  ;;  %v3751_v59 = vunpack.i.l.bf16 %v3750_v55 }
 0x3ec   : > { %v3529_v57 = vpack.c.bf16 %v3752_v56, %v3751_v59 }
 0x3ed   : > { %v1524_v58 = vpop.permute.xlu1 %1523 }
 0x3f1   : > { %v1528_v62 = vpop.permute.xlu1 %1527 }
 0x3f5   : > { %v1532_v0 = vpop.permute.xlu1 %1531 }
 0x3f9   : > { %v653_v10 = vpop.xlane.xlu0 %652  ;;  %v1536_v4 = vpop.permute.xlu1 %1535 }
 0x3fa   : > { %3863 = vrcp.f32 %v653_v10 }
 0x3fd   : > { %v3720_v12 = vpop.permute.xlu0 %3719 }
 0x3fe   : > { %v3722_v15 = vunpack.i.h.bf16 %v3720_v12  ;;  %v3721_v17 = vunpack.i.l.bf16 %v3720_v12 }
 0x400   : > { %v3477_v20 = vpack.c.bf16 %v3722_v15, %v3721_v17 }
 0x401   : > { %v832_v27 = vpop.permute.xlu0 %831 }
 0x402   : > { %3479 = vmatprep.subr.msk.bf16.mxu0 %vm4188_vm2, %v3477_v20 }
 0x403   : > { %3482 = vmatpush3.bf16.xpose.msk.msra.mxu0 %vm4188_vm2, %v3477_v20  ;;  %v2830_v20 = vld [vmem:[%s4928_s5 + $0x40] sm:$0xff] }
 0x404   : > { %v3864_v3 = vpop.eup %3863  ;;  %3485 = vmatprep.subr.msk.bf16.mxu0 %vm4188_vm2, %v3483_v30 }
 0x405   : > { %v836_v32 = vpop.permute.xlu0 %835  ;;  %v670_v35 = vmul.f32 %v3864_v3, %v4311_v45 }
 0x407   : > { %3196 = vmatprep.mubr.msk.f32.mxu0 %vm584_vm3, %v670_v35 }
 0x408   : > { %3197 = vmatmul.mubr.msk.f32.gmra.mrb[14].mxu0 %vm584_vm3, %v672_v40 }
 0x409   : > { %v840_v42 = vpop.permute.xlu0 %839  ;;  %3215 = vmatprep.mubr.msk.f32.mxu0 %vm422_vm1, %v828_v9 }
 0x40b   : > { %3488 = vmatpush3.bf16.xpose.msk.msra.mxu0 %vm4188_vm2, %v3483_v30 }
 0x40c   : > { %3491 = vmatprep.subr.msk.bf16.mxu0 %vm4188_vm2, %v3489_v43 }
 0x40d   : > { %v3735_v45 = vpop.permute.xlu0 %3734 }
 0x40e   : > { %v3737_v39 = vunpack.i.h.bf16 %v3735_v45  ;;  %v3736_v46 = vunpack.i.l.bf16 %v3735_v45 }
 0x410   : > { %v3511_v22 = vpack.c.bf16 %v3737_v39, %v3736_v46  ;;  %v2834_v39 = vld [vmem:[%s4928_s5 + $0x60] sm:$0xff] }
 0x411   : > { %v3745_v51 = vpop.permute.xlu0 %3744 }
 0x412   : > { %v3747_v52 = vunpack.i.h.bf16 %v3745_v51  ;;  %v3746_v53 = vunpack.i.l.bf16 %v3745_v51 }
 0x413   : > { %3494 = vmatpush3.bf16.xpose.msk.msra.mxu0 %vm4188_vm2, %v3489_v43 }
 0x414   : > { %3513 = vmatprep.subr.msk.bf16.mxu0 %vm4188_vm2, %v3511_v22  ;;  %v3523_v54 = vpack.c.bf16 %v3747_v52, %v3746_v53  ;;  %v2836_v53 = vld [vmem:[%s4928_s5 + $0x70] sm:$0xff] }
 0x415   : > { %v1522_v60 = vpop.permute.xlu0 %1521 }
 0x419   : > { %v1526_v61 = vpop.permute.xlu0 %1525 }
 0x41a   : > { %3216 = vmatmul.mubr.msk.f32.vlgmr.msra.gmra.mrb[16].mxu0 %vm422_vm1, %v830_v11 }
 0x41b   : > { %3218 = vmatprep.mubr.msk.f32.mxu0 %vm422_vm1, %v832_v27  ;;  %3516 = vmatpush3.bf16.xpose.msk.msra.mxu0 %vm4188_vm2, %v3511_v22 }
 0x41c   : > { %3519 = vmatprep.subr.msk.bf16.mxu0 %vm4188_vm2, %v3517_v50 }
 0x41d   : > { %v1530_v63 = vpop.permute.xlu0 %1529 }
 0x41e   : > { %3219 = vmatmul.mubr.msk.f32.gmra.mrb[18].mxu0 %vm422_vm1, %v834_v25 }
 0x41f   : > { %3221 = vmatprep.mubr.msk.f32.mxu0 %vm422_vm1, %v836_v32 }
 0x421   : > { %v1534_v1 = vpop.permute.xlu0 %1533 }
 0x422   : > { %3222 = vmatmul.mubr.msk.f32.gmra.mrb[20].mxu0 %vm422_vm1, %v838_v41  ;;  %v2833_v41 = vld [vmem:[%s4928_s5 + $0x58] sm:$0xff] }
 0x423   : > { %3224 = vmatprep.mubr.msk.f32.mxu0 %vm422_vm1, %v840_v42  ;;  %3522 = vmatpush3.bf16.xpose.msk.msra.mxu0 %vm4188_vm2, %v3517_v50 }
 0x424   : > { %3525 = vmatprep.subr.msk.bf16.mxu0 %vm4188_vm2, %v3523_v54 }
 0x426   : > { %3225 = vmatmul.mubr.msk.f32.gmra.mrb[22].mxu0 %vm422_vm1, %v842_v44 }
 0x427   : > { %3299 = vmatprep.mubr.msk.f32.mxu0 %vm422_vm1, %v1522_v60  ;;  %v2837_v60 = vld [vmem:[%s4928_s5 + $0x78] sm:$0xff] }
 0x42b   : > { %3528 = vmatpush3.bf16.xpose.msk.msra.mxu0 %vm4188_vm2, %v3523_v54 }
 0x42c   : > { %3531 = vmatprep.subr.msk.bf16.mxu0 %vm4188_vm2, %v3529_v57 }
 0x433   : > { %3534 = vmatpush3.bf16.xpose.msk.msra.mxu0 %vm4188_vm2, %v3529_v57 }
 0x43a   : > { %3300 = vmatmul.mubr.msk.f32.vlgmr.msra.gmra.mrb[24].mxu0 %vm422_vm1, %v1524_v58 }
 0x43b   : > { %3302 = vmatprep.mubr.msk.f32.mxu0 %vm422_vm1, %v1526_v61 }
 0x43e   : > { %3303 = vmatmul.mubr.msk.f32.gmra.mrb[26].mxu0 %vm422_vm1, %v1528_v62 }
 0x43f   : > { %3305 = vmatprep.mubr.msk.f32.mxu0 %vm422_vm1, %v1530_v63 }
 0x442   : > { %3306 = vmatmul.mubr.msk.f32.gmra.mrb[28].mxu0 %vm422_vm1, %v1532_v0 }
 0x443   : > { %3308 = vmatprep.mubr.msk.f32.mxu0 %vm422_vm1, %v1534_v1 }
 0x446   : > { %3309 = vmatmul.mubr.msk.f32.gmra.mrb[30].mxu0 %vm422_vm1, %v1536_v4 }
 0x472   : > { %v4402_v2 = vpop.f32.mrb[8].mxu0 }
 0x473   : > { %v4404_v5 = vpop.f32.mrb[9].mxu0 }
 0x4a6   : > { %v4406_v7 = vpop.f32.mrb[10].mxu0 }
 0x4a7   : > { %v4408_v8 = vpop.f32.mrb[11].mxu0 }
 0x4aa   : > { %v4410_v9 = vpop.f32.mrb[12].mxu0 }
 0x4ab   : > { %v4412_v10 = vpop.f32.mrb[13].mxu0 }
 0x4db   : > { %v4414_v11 = vpop.f32.mrb[14].mxu0 }
 0x4dc   : > { %v4416_v12 = vpop.f32.mrb[15].mxu0 }
 0x4ed   : > { %v3217_v13 = vpop.f32.mrb[16].mxu0 }
 0x4ee   : > { %v997_v15 = vmul.f32 0.35355338, %v3217_v13  ;;  %v957_v17 = vpop.f32.mrb[17].mxu0 }
 0x4ef   : > { %v996_v25 = vmul.f32 0.35355338, %v957_v17 }
 0x4f0   : > { %v1014_v27 = vadd.f32 %v2831_v14, %v997_v15 }
 0x4f1   : > { %v3220_v30 = vpop.f32.mrb[18].mxu0  ;;  %v1013_v6 = vadd.f32 %v2830_v20, %v996_v25 }
 0x4f2   : > { %v999_v3 = vmul.f32 0.35355338, %v3220_v30  ;;  %v967_v32 = vpop.f32.mrb[19].mxu0  ;;  %v1024_v35 = vsel %vm584_vm3, %v1014_v27, -inf }
 0x4f3   : > { %v998_v37 = vmul.f32 0.35355338, %v967_v32  ;;  %1025 = vmax.xlane.f32.xlu1 %v1024_v35  ;;  %v1021_v40 = vsel %vm584_vm3, %v1013_v6, -inf }
 0x4f4   : > { %1022 = vmax.xlane.f32.xlu0 %v1021_v40  ;;  %v1016_v45 = vadd.f32 %v2833_v41, %v999_v3 }
 0x4f5   : > { %v3223_v42 = vpop.f32.mrb[20].mxu0  ;;  %v1015_v43 = vadd.f32 %v2832_v36, %v998_v37 }
 0x4f6   : > { %v977_v44 = vpop.f32.mrb[21].mxu0  ;;  %v1001_v46 = vmul.f32 0.35355338, %v3223_v42  ;;  %v1030_v52 = vsel %vm584_vm3, %v1016_v45, -inf }
 0x4f7   : > { %v1000_v22 = vmul.f32 0.35355338, %v977_v44  ;;  %v1027_v47 = vsel %vm584_vm3, %v1015_v43, -inf }
 0x4f8   : > { %1028 = vmax.xlane.f32.xlu0 %v1027_v47  ;;  %v1018_v59 = vadd.f32 %v2835_v48, %v1001_v46 }
 0x4f9   : > { %v3226_v49 = vpop.f32.mrb[22].mxu0  ;;  %v1017_v50 = vadd.f32 %v2834_v39, %v1000_v22 }
 0x4fa   : > { %v987_v51 = vpop.f32.mrb[23].mxu0  ;;  %v1003_v54 = vmul.f32 0.35355338, %v3226_v49  ;;  %v1036_v58 = vsel %vm584_vm3, %v1018_v59, -inf }
 0x4fb   : > { %v1002_v55 = vmul.f32 0.35355338, %v987_v51  ;;  %v1033_v56 = vsel %vm584_vm3, %v1017_v50, -inf }
 0x4fc   : > { %1031 = vmax.xlane.f32.xlu0 %v1030_v52  ;;  %1034 = vmax.xlane.f32.xlu1 %v1033_v56  ;;  %v1020_v62 = vadd.f32 %v2837_v60, %v1003_v54 }
 0x4fd   : > { %v1019_v57 = vadd.f32 %v2836_v53, %v1002_v55 }
 0x4fe   : > { %v1042_v63 = vsel %vm584_vm3, %v1020_v62, -inf }
 0x4ff   : > { %v1039_v61 = vsel %vm584_vm3, %v1019_v57, -inf }
 0x500   : > { %1037 = vmax.xlane.f32.xlu0 %v1036_v58  ;;  %1040 = vmax.xlane.f32.xlu1 %v1039_v61 }
 0x504   : > { %1043 = vmax.xlane.f32.xlu0 %v1042_v63 }
 0x50d   : > { %v4450_v0 = vpop.f32.mrb[24].mxu0 }
 0x50e   : > { %v4452_v1 = vpop.f32.mrb[25].mxu0 }
 0x511   : > { %v4454_v4 = vpop.f32.mrb[26].mxu0  ;;  %3754 = vrot.lane.b32.xlu1 %v4156_v19, %s4031_s17 }
 0x512   : > { %v4458_v13 = vpop.f32.mrb[27].mxu0 }
 0x515   : > { %v4460_v14 = vpop.f32.mrb[28].mxu0 }
 0x516   : > { %v4462_v15 = vpop.f32.mrb[29].mxu0 }
 0x519   : > { %v4464_v17 = vpop.f32.mrb[30].mxu0 }
 0x51a   : > { %v4466_v20 = vpop.f32.mrb[31].mxu0 }
 0x580   : > { %v1026_v25 = vpop.xlane.xlu1 %1025 }
 0x581   : > { %v1046_v30 = vsub.f32 %v1014_v27, %v1026_v25  ;;  %v1023_v3 = vpop.xlane.xlu0 %1022 }
 0x582   : > { %v1045_v32 = vsub.f32 %v1013_v6, %v1023_v3 }
 0x583   : > { %v1055_v35 = vmul.f32 1.442695, %v1046_v30 }
 0x584   : > { %v1053_v36 = vmul.f32 1.442695, %v1045_v32 }
 0x585   : > { %3865 = vpow2.f32 %v1055_v35  ;;  %v1029_v37 = vpop.xlane.xlu0 %1028 }
 0x586   : > { %3867 = vpow2.f32 %v1053_v36  ;;  %v1047_v40 = vsub.f32 %v1015_v43, %v1029_v37 }
 0x588   : > { %v1057_v41 = vmul.f32 1.442695, %v1047_v40 }
 0x589   : > { %v1032_v42 = vpop.xlane.xlu0 %1031  ;;  %v1035_v44 = vpop.xlane.xlu1 %1034 }
 0x58a   : > { %3869 = vpow2.f32 %v1057_v41  ;;  %v1048_v39 = vsub.f32 %v1016_v45, %v1032_v42  ;;  %v1049_v46 = vsub.f32 %v1017_v50, %v1035_v44  ;;  %v1690_v42 = vmul.f32 0.35355338, %v4452_v1 }
 0x58b   : > { %v1693_v1 = vmul.f32 0.35355338, %v4454_v4  ;;  %v2884_v4 = vld [vmem:[%s4928_s5 + $0xb0] sm:$0xff] }
 0x58c   : > { %v1059_v22 = vmul.f32 1.442695, %v1048_v39  ;;  %v1061_v47 = vmul.f32 1.442695, %v1049_v46  ;;  %v1696_v39 = vmul.f32 0.35355338, %v4466_v20 }
 0x58d   : > { %v1038_v48 = vpop.xlane.xlu0 %1037  ;;  %v1041_v49 = vpop.xlane.xlu1 %1040 }
 0x58e   : > { %3871 = vpow2.f32 %v1059_v22  ;;  %v1050_v27 = vsub.f32 %v1018_v59, %v1038_v48  ;;  %v1051_v53 = vsub.f32 %v1019_v57, %v1041_v49  ;;  %v2881_v22 = vld [vmem:[%s4928_s5 + $0x98] sm:$0xff] }
 0x58f   : > { %v4468_v51 = vpop.eup %3865  ;;  %3873 = vpow2.f32 %v1061_v47  ;;  %v1695_v47 = vmul.f32 0.35355338, %v4460_v14  ;;  %v4557_v48 = vadd.f32 %v2881_v22, %v1693_v1 }
 0x590   : > { %v4470_v6 = vpop.eup %3867  ;;  %v1063_v52 = vmul.f32 1.442695, %v1050_v27  ;;  %v1072_v43 = vsel %vm584_vm3, %v4468_v51, 0.0  ;;  %v1065_v58 = vmul.f32 1.442695, %v1051_v53  ;;  %v4561_v27 = vadd.f32 %v2884_v4, %v1696_v39 }
 0x591   : > { %1073 = vadd.xlane.f32.xlu0 %v1072_v43  ;;  %v1044_v54 = vpop.xlane.xlu0 %1043  ;;  %v3755_v45 = vpop.permute.xlu1 %3754  ;;  %v1069_v50 = vsel %vm584_vm3, %v4470_v6, 0.0  ;;  %v1697_v53 = vmul.f32 0.35355338, %v4464_v17  ;;  %v1724_v14 = vsel %vm584_vm3, %v4557_v48, -inf }
 0x592   : > { %3875 = vpow2.f32 %v1063_v52  ;;  %v1052_v55 = vsub.f32 %v1020_v62, %v1044_v54  ;;  %v3757_v56 = vunpack.i.h.bf16 %v3755_v45  ;;  %v3756_v59 = vunpack.i.l.bf16 %v3755_v45  ;;  %1070 = vadd.xlane.f32.xlu1 %v1069_v50  ;;  %v2883_v52 = vld [vmem:[%s4928_s5 + $0xa8] sm:$0xff]  ;;  %v2885_v45 = vld [vmem:[%s4928_s5 + $0xb8] sm:$0xff] }
 0x593   : > { %v4569_v43 = vadd.f32 %v2883_v52, %v1695_v47  ;;  %v1733_v54 = vsel %vm584_vm3, %v4561_v27, -inf }
 0x594   : > { %v4476_v60 = vpop.eup %3869  ;;  %v1067_v61 = vmul.f32 1.442695, %v1052_v55  ;;  %v3495_v63 = vpack.c.bf16 %v3757_v56, %v3756_v59  ;;  %v4578_v55 = vadd.f32 %v2885_v45, %v1697_v53 }
 0x595   : > { %v1075_v57 = vsel %vm584_vm3, %v4476_v60, 0.0  ;;  %v1730_v50 = vsel %vm584_vm3, %v4569_v43, -inf }
 0x596   : > { %3877 = vpow2.f32 %v1067_v61  ;;  %1076 = vadd.xlane.f32.xlu1 %v1075_v57  ;;  %3496 = vmatprep.subr.bf16.mxu1 %v3495_v63  ;;  %v1736_v17 = vsel %vm584_vm3, %v4578_v55, -inf }
 0x597   : > { %3498 = vmatpush3.bf16.msra.mxu1 %v3495_v63  ;;  %3879 = vpow2.f32 %v1065_v58 }
 0x598   : > { %v4480_v25 = vpop.eup %3871 }
 0x599   : > { %v4482_v30 = vpop.eup %3873  ;;  %v1078_v62 = vsel %vm584_vm3, %v4480_v25, 0.0 }
 0x59a   : > { %1079 = vadd.xlane.f32.xlu0 %v1078_v62  ;;  %v1081_v3 = vsel %vm584_vm3, %v4482_v30, 0.0 }
 0x59b   : > { %1082 = vadd.xlane.f32.xlu1 %v1081_v3 }
 0x59c   : > { %v4488_v32 = vpop.eup %3875 }
 0x59d   : > { %v1084_v35 = vsel %vm584_vm3, %v4488_v32, 0.0 }
 0x59e   : > { %1085 = vadd.xlane.f32.xlu0 %v1084_v35 }
 0x5a0   : > { %v4492_v36 = vpop.eup %3877 }
 0x5a1   : > { %v1090_v37 = vsel %vm584_vm3, %v4492_v36, 0.0  ;;  %v4496_v40 = vpop.eup %3879 }
 0x5a2   : > { %1091 = vadd.xlane.f32.xlu0 %v1090_v37  ;;  %v1087_v41 = vsel %vm584_vm3, %v4496_v40, 0.0 }
 0x5a6   : > { %1088 = vadd.xlane.f32.xlu0 %v1087_v41 }
 0x5ac   : > { %3764 = vrot.lane.b32.xlu1 %v4174_v29, %s4031_s17 }
 0x5b0   : > { %3769 = vrot.lane.b32.xlu1 %v4183_v34, %s4031_s17 }
 0x5b4   : > { %3774 = vrot.lane.b32.xlu1 %v4156_v19, %s4032_s18 }
 0x5b8   : > { %3779 = vrot.lane.b32.xlu1 %v4165_v24, %s4032_s18 }
 0x5bc   : > { %3789 = vrot.lane.b32.xlu1 %v4183_v34, %s4032_s18  ;;  %3759 = vrot.lane.b32.xlu0 %v4165_v24, %s4031_s17 }
 0x5c0   : > { %2096 = vrot.lane.b32.xlu1 %v4148_v16, %s4033_s19  ;;  %3784 = vrot.lane.b32.xlu0 %v4174_v29, %s4032_s18  ;;  %v1691_v16 = vmul.f32 0.35355338, %v4450_v0  ;;  %v2882_v0 = vld [vmem:[%s4928_s5 + $0xa0] sm:$0xff] }
 0x5c4   : > { %2100 = vrot.lane.b32.xlu1 %v4158_v21, %s4033_s19  ;;  %2094 = vrot.lane.b32.xlu0 %v4150_v18, %s4033_s19  ;;  %v2878_v21 = vld [vmem:[%s4928_s5 + $0x80] sm:$0xff]  ;;  %v2879_v18 = vld [vmem:[%s4928_s5 + $0x88] sm:$0xff] }
 0x5c8   : > { %2104 = vrot.lane.b32.xlu1 %v4167_v26, %s4033_s19  ;;  %2098 = vrot.lane.b32.xlu0 %v4161_v23, %s4033_s19  ;;  %v1692_v23 = vmul.f32 0.35355338, %v4458_v13  ;;  %v4527_v26 = vadd.f32 %v2878_v21, %v1690_v42 }
 0x5ca   : > { %v1715_v44 = vsel %vm584_vm3, %v4527_v26, -inf }
 0x5cc   : > { %2108 = vrot.lane.b32.xlu1 %v4176_v31, %s4033_s19  ;;  %2102 = vrot.lane.b32.xlu0 %v4170_v28, %s4033_s19  ;;  %v1694_v28 = vmul.f32 0.35355338, %v4462_v15  ;;  %v4530_v31 = vadd.f32 %v2879_v18, %v1691_v16 }
 0x5ce   : > { %v1718_v15 = vsel %vm584_vm3, %v4530_v31, -inf  ;;  %v4546_v46 = vadd.f32 %v2882_v0, %v1694_v28 }
 0x5d0   : > { %2106 = vrot.lane.b32.xlu0 %v4179_v33, %s4033_s19  ;;  %v2880_v33 = vld [vmem:[%s4928_s5 + $0x90] sm:$0xff]  ;;  %v1727_v49 = vsel %vm584_vm3, %v4546_v46, -inf  ;;  %s242_s19 = sand.u32 1, %s4015_s22  }
 0x5d1   : > { %v4541_v13 = vadd.f32 %v2880_v33, %v1692_v23  ;;  %s2708_s11 = scalar_lea.sflag [#allocation3], %s242_s19 }
 0x5d3   : > { %v1721_v20 = vsel %vm584_vm3, %v4541_v13, -inf }
 0x5ef   : > { %1716 = vmax.xlane.f32.xlu0 %v1715_v44 }
 0x5f0   : > { %1719 = vmax.xlane.f32.xlu1 %v1718_v15 }
 0x5f3   : > { %1722 = vmax.xlane.f32.xlu0 %v1721_v20 }
 0x5f4   : > { %1728 = vmax.xlane.f32.xlu1 %v1727_v49 }
 0x5f7   : > { %1725 = vmax.xlane.f32.xlu0 %v1724_v14 }
 0x5f8   : > { %1734 = vmax.xlane.f32.xlu1 %v1733_v54 }
 0x5fb   : > { %1731 = vmax.xlane.f32.xlu0 %v1730_v50 }
 0x5ff   : > { %1737 = vmax.xlane.f32.xlu0 %v1736_v17 }
 0x609   : > { %3794 = vrot.lane.b32.xlu1 %v4156_v19, %s4034_s26 }
 0x61e   : > { %v1074_v59 = vpop.xlane.xlu0 %1073 }
 0x61f   : > { %v1071_v56 = vpop.xlane.xlu1 %1070 }
 0x620   : > { %3881 = vrcp.f32 %v1071_v56 }
 0x621   : > { %3883 = vrcp.f32 %v1074_v59 }
 0x623   : > { %v1077_v58 = vpop.xlane.xlu1 %1076 }
 0x624   : > { %3885 = vrcp.f32 %v1077_v58 }
 0x627   : > { %v1080_v61 = vpop.xlane.xlu0 %1079 }
 0x628   : > { %v1083_v63 = vpop.xlane.xlu1 %1082  ;;  %3887 = vrcp.f32 %v1080_v61 }
 0x629   : > { %3889 = vrcp.f32 %v1083_v63 }
 0x62a   : > { %v3882_v57 = vpop.eup %3881 }
 0x62b   : > { %v1086_v62 = vpop.xlane.xlu0 %1085  ;;  %v1094_v3 = vmul.f32 %v3882_v57, %v4470_v6  ;;  %v3884_v56 = vpop.eup %3883 }
 0x62c   : > { %v3765_v35 = vpop.permute.xlu1 %3764  ;;  %3891 = vrcp.f32 %v1086_v62  ;;  %v1096_v63 = vmul.f32 %v3884_v56, %v4468_v51 }
 0x62d   : > { %3243 = vmatprep.mubr.msk.f32.mxu1 %vm584_vm3, %v1094_v3  ;;  %v3767_v33 = vunpack.i.h.bf16 %v3765_v35  ;;  %v3766_v0 = vunpack.i.l.bf16 %v3765_v35 }
 0x62e   : > { %v3886_v59 = vpop.eup %3885 }
 0x62f   : > { %v1092_v37 = vpop.xlane.xlu0 %1091  ;;  %v3503_v20 = vpack.c.bf16 %v3767_v33, %v3766_v0  ;;  %v1098_v62 = vmul.f32 %v3886_v59, %v4476_v60 }
 0x630   : > { %v3770_v41 = vpop.permute.xlu1 %3769 }
 0x631   : > { %v3772_v49 = vunpack.i.h.bf16 %v3770_v41  ;;  %v3771_v52 = vunpack.i.l.bf16 %v3770_v41 }
 0x632   : > { %v3888_v57 = vpop.eup %3887 }
 0x633   : > { %v1089_v42 = vpop.xlane.xlu0 %1088  ;;  %v3507_v45 = vpack.c.bf16 %v3772_v49, %v3771_v52  ;;  %v3890_v3 = vpop.eup %3889  ;;  %v1100_v41 = vmul.f32 %v3888_v57, %v4480_v25 }
 0x634   : > { %v3775_v16 = vpop.permute.xlu1 %3774  ;;  %3893 = vrcp.f32 %v1089_v42  ;;  %v1102_v51 = vmul.f32 %v3890_v3, %v4482_v30 }
 0x635   : > { %v3777_v21 = vunpack.i.h.bf16 %v3775_v16  ;;  %v3776_v18 = vunpack.i.l.bf16 %v3775_v16  ;;  %3895 = vrcp.f32 %v1092_v37 }
 0x636   : > { %v3892_v37 = vpop.eup %3891 }
 0x637   : > { %v3551_v23 = vpack.c.bf16 %v3777_v21, %v3776_v18  ;;  %v3760_v28 = vpop.permute.xlu0 %3759  ;;  %v1104_v60 = vmul.f32 %v3892_v37, %v4488_v32 }
 0x638   : > { %v3762_v1 = vunpack.i.h.bf16 %v3760_v28  ;;  %v3761_v44 = vunpack.i.l.bf16 %v3760_v28  ;;  %v3780_v39 = vpop.permute.xlu1 %3779 }
 0x639   : > { %v3782_v15 = vunpack.i.h.bf16 %v3780_v39  ;;  %v3781_v22 = vunpack.i.l.bf16 %v3780_v39  ;;  %3553 = vmatprep.subr.msk.bf16.mxu0 %vm4188_vm2, %v3551_v23 }
 0x63a   : > { %v3499_v6 = vpack.c.bf16 %v3762_v1, %v3761_v44  ;;  %3556 = vmatpush3.bf16.xpose.msk.msra.mxu0 %vm4188_vm2, %v3551_v23 }
 0x63b   : > { %v3557_v4 = vpack.c.bf16 %v3782_v15, %v3781_v22  ;;  %v3785_v47 = vpop.permute.xlu0 %3784 }
 0x63c   : > { %3500 = vmatprep.subr.bf16.mxu1 %v3499_v6  ;;  %v3787_v53 = vunpack.i.h.bf16 %v3785_v47  ;;  %v3786_v14 = vunpack.i.l.bf16 %v3785_v47  ;;  %v3790_v17 = vpop.permute.xlu1 %3789 }
 0x63d   : > { %3559 = vmatprep.subr.msk.bf16.mxu0 %vm4188_vm2, %v3557_v4  ;;  %3502 = vmatpush3.bf16.msra.mxu1 %v3499_v6  ;;  %v3792_v58 = vunpack.i.h.bf16 %v3790_v17  ;;  %v3791_v61 = vunpack.i.l.bf16 %v3790_v17 }
 0x63e   : > { %3504 = vmatprep.subr.bf16.mxu1 %v3503_v20  ;;  %v3563_v50 = vpack.c.bf16 %v3787_v53, %v3786_v14  ;;  %v3894_v42 = vpop.eup %3893 }
 0x63f   : > { %v2095_v54 = vpop.permute.xlu0 %2094  ;;  %v3569_v35 = vpack.c.bf16 %v3792_v58, %v3791_v61  ;;  %v3896_v16 = vpop.eup %3895  ;;  %v1106_v21 = vmul.f32 %v3894_v42, %v4496_v40  ;;  %v826_v42 = vld [vmem:[%s4926_s3] sm:$0xff] }
 0x640   : > { %3369 = vmatprep.mubr.msk.f32.mxu0 %vm422_vm1, %v2095_v54  ;;  %v2097_v25 = vpop.permute.xlu1 %2096  ;;  %v1108_v30 = vmul.f32 %v3896_v16, %v4492_v36 }
 0x641   : > { %3506 = vmatpush3.bf16.msra.mxu1 %v3503_v20 }
 0x642   : > { %3562 = vmatpush3.bf16.xpose.msk.msra.mxu0 %vm4188_vm2, %v3557_v4  ;;  %3508 = vmatprep.subr.bf16.mxu1 %v3507_v45 }
 0x643   : > { %3565 = vmatprep.subr.msk.bf16.mxu0 %vm4188_vm2, %v3563_v50  ;;  %v2099_v18 = vpop.permute.xlu0 %2098 }
 0x644   : > { %v2101_v23 = vpop.permute.xlu1 %2100 }
 0x645   : > { %3510 = vmatpush3.bf16.msra.mxu1 %v3507_v45 }
 0x647   : > { %v2103_v32 = vpop.permute.xlu0 %2102 }
 0x648   : > { %3244 = vmatmul.mubr.msk.f32.vlgmr.msra.gmra.mrb[8].mxu1 %vm584_vm3, %v1096_v63  ;;  %v2105_v40 = vpop.permute.xlu1 %2104 }
 0x649   : > { %3246 = vmatprep.mubr.msk.f32.mxu1 %vm584_vm3, %v1098_v62 }
 0x64a   : > { %3568 = vmatpush3.bf16.xpose.msk.msra.mxu0 %vm4188_vm2, %v3563_v50 }
 0x64b   : > { %3571 = vmatprep.subr.msk.bf16.mxu0 %vm4188_vm2, %v3569_v35  ;;  %v2107_v28 = vpop.permute.xlu0 %2106 }
 0x64c   : > { %3247 = vmatmul.mubr.msk.f32.gmra.mrb[10].mxu1 %vm584_vm3, %v1100_v41  ;;  %v2109_v38 = vpop.permute.xlu1 %2108  ;;  %v1262_v41 = vld [vmem:[%s4926_s3 + $0x8] sm:$0xff] }
 0x64d   : > { %3249 = vmatprep.mubr.msk.f32.mxu1 %vm584_vm3, %v1102_v51  ;;  %3255 = vmatprep.subr.mxu1 %v1262_v41 }
 0x64e   : > { %3256 = vmatpush3.msra.mxu1 %v1262_v41 }
 0x64f   : > { %3269 = vmatprep.subr.mxu1 %v826_v42 }
 0x650   : > { %3250 = vmatmul.mubr.msk.f32.gmra.mrb[12].mxu1 %vm584_vm3, %v1104_v60 }
 0x651   : > { %3252 = vmatprep.mubr.msk.f32.mxu1 %vm584_vm3, %v1106_v21 }
 0x652   : > { %3574 = vmatpush3.bf16.xpose.msk.msra.mxu0 %vm4188_vm2, %v3569_v35 }
 0x654   : > { %3253 = vmatmul.mubr.msk.f32.gmra.mrb[14].mxu1 %vm584_vm3, %v1108_v30 }
 0x659   : > { %3370 = vmatmul.mubr.msk.f32.vlgmr.msra.gmra.mrb[32].mxu0 %vm422_vm1, %v2097_v25 }
 0x65a   : > { %3372 = vmatprep.mubr.msk.f32.mxu0 %vm422_vm1, %v2099_v18 }
 0x65d   : > { %3373 = vmatmul.mubr.msk.f32.gmra.mrb[34].mxu0 %vm422_vm1, %v2101_v23 }
 0x65e   : > { %3375 = vmatprep.mubr.msk.f32.mxu0 %vm422_vm1, %v2103_v32 }
 0x661   : > { %3376 = vmatmul.mubr.msk.f32.gmra.mrb[36].mxu0 %vm422_vm1, %v2105_v40 }
 0x662   : > { %3378 = vmatprep.mubr.msk.f32.mxu0 %vm422_vm1, %v2107_v28 }
 0x665   : > { %3379 = vmatmul.mubr.msk.f32.gmra.mrb[38].mxu0 %vm422_vm1, %v2109_v38 }
 0x67c   : > { %v1717_v36 = vpop.xlane.xlu0 %1716 }
 0x67d   : > { %v1739_v33 = vsub.f32 %v4527_v26, %v1717_v36  ;;  %v1720_v0 = vpop.xlane.xlu1 %1719 }
 0x67e   : > { %v1740_v1 = vsub.f32 %v4530_v31, %v1720_v0 }
 0x67f   : > { %v1747_v44 = vmul.f32 1.442695, %v1739_v33 }
 0x680   : > { %v1749_v39 = vmul.f32 1.442695, %v1740_v1  ;;  %v1723_v15 = vpop.xlane.xlu0 %1722 }
 0x681   : > { %3897 = vpow2.f32 %v1747_v44  ;;  %v1741_v22 = vsub.f32 %v4541_v13, %v1723_v15  ;;  %v1729_v6 = vpop.xlane.xlu1 %1728 }
 0x682   : > { %3899 = vpow2.f32 %v1749_v39  ;;  %v1743_v4 = vsub.f32 %v4546_v46, %v1729_v6 }
 0x683   : > { %v1751_v47 = vmul.f32 1.442695, %v1741_v22 }
 0x684   : > { %v1755_v20 = vmul.f32 1.442695, %v1743_v4  ;;  %v1726_v49 = vpop.xlane.xlu0 %1725 }
 0x685   : > { %3901 = vpow2.f32 %v1751_v47  ;;  %v1742_v52 = vsub.f32 %v4557_v48, %v1726_v49  ;;  %v1735_v53 = vpop.xlane.xlu1 %1734  ;;  %v2919_v47 = vld [vmem:[%s4928_s5 + $0xc8] sm:$0xff] }
 0x686   : > { %3903 = vpow2.f32 %v1755_v20  ;;  %v1745_v13 = vsub.f32 %v4561_v27, %v1735_v53 }
 0x687   : > { %v1753_v26 = vmul.f32 1.442695, %v1742_v52  ;;  %v2918_v52 = vld [vmem:[%s4928_s5 + $0xc0] sm:$0xff] }
 0x688   : > { %v1732_v31 = vpop.xlane.xlu0 %1731  ;;  %v1759_v59 = vmul.f32 1.442695, %v1745_v13 }
 0x689   : > { %3905 = vpow2.f32 %v1753_v26  ;;  %v1744_v14 = vsub.f32 %v4569_v43, %v1732_v31  ;;  %v3795_v16 = vpop.permute.xlu1 %3794 }
 0x68a   : > { %v3797_v21 = vunpack.i.h.bf16 %v3795_v16  ;;  %v3796_v25 = vunpack.i.l.bf16 %v3795_v16 }
 0x68b   : > { %v4630_v54 = vpop.eup %3897  ;;  %v1757_v45 = vmul.f32 1.442695, %v1744_v14 }
 0x68c   : > { %v4633_v50 = vpop.eup %3899  ;;  %v1738_v46 = vpop.xlane.xlu0 %1737  ;;  %v1763_v17 = vsel %vm584_vm3, %v4630_v54, 0.0  ;;  %v3535_v32 = vpack.c.bf16 %v3797_v21, %v3796_v25  ;;  %v2922_v25 = vld [vmem:[%s4928_s5 + $0xe0] sm:$0xff] }
 0x68d   : > { %3907 = vpow2.f32 %v1757_v45  ;;  %v1746_v48 = vsub.f32 %v4578_v55, %v1738_v46  ;;  %1764 = vadd.xlane.f32.xlu1 %v1763_v17  ;;  %v1766_v56 = vsel %vm584_vm3, %v4633_v50, 0.0  ;;  %v2921_v45 = vld [vmem:[%s4928_s5 + $0xd8] sm:$0xff] }
 0x68e   : > { %1767 = vadd.xlane.f32.xlu0 %v1766_v56 }
 0x68f   : > { %v4640_v43 = vpop.eup %3901  ;;  %v1761_v58 = vmul.f32 1.442695, %v1746_v48 }
 0x690   : > { %v1769_v27 = vsel %vm584_vm3, %v4640_v43, 0.0  ;;  %v4644_v61 = vpop.eup %3903 }
 0x691   : > { %3909 = vpow2.f32 %v1761_v58  ;;  %1770 = vadd.xlane.f32.xlu1 %v1769_v27  ;;  %v1775_v57 = vsel %vm584_vm3, %v4644_v61, 0.0 }
 0x692   : > { %3911 = vpow2.f32 %v1759_v59 }
 0x693   : > { %v4646_v63 = vpop.eup %3905 }
 0x694   : > { %v1772_v55 = vsel %vm584_vm3, %v4646_v63, 0.0 }
 0x695   : > { %1773 = vadd.xlane.f32.xlu0 %v1772_v55  ;;  %1776 = vadd.xlane.f32.xlu1 %v1775_v57 }
 0x697   : > { %v4652_v62 = vpop.eup %3907 }
 0x698   : > { %v1778_v3 = vsel %vm584_vm3, %v4652_v62, 0.0 }
 0x699   : > { %1779 = vadd.xlane.f32.xlu0 %v1778_v3 }
 0x69b   : > { %v4656_v35 = vpop.eup %3909 }
 0x69c   : > { %v1784_v37 = vsel %vm584_vm3, %v4656_v35, 0.0  ;;  %v4663_v51 = vpop.eup %3911 }
 0x69d   : > { %1785 = vadd.xlane.f32.xlu0 %v1784_v37  ;;  %v1781_v60 = vsel %vm584_vm3, %v4663_v51, 0.0 }
 0x6a1   : > { %1782 = vadd.xlane.f32.xlu0 %v1781_v60 }
 0x6a6   : > { %3804 = vrot.lane.b32.xlu1 %v4174_v29, %s4034_s26 }
 0x6aa   : > { %3809 = vrot.lane.b32.xlu1 %v4183_v34, %s4034_s26 }
 0x6b7   : > { %3799 = vrot.lane.b32.xlu0 %v4165_v24, %s4034_s26  ;;  %s243_s26 = scalar_lea.vmem [#allocation2], %s242_s19 }
 0x6b8   : > { %s2720_s28 = sshll.u32 %s243_s26, 4  ;;  %s4883_s28 = int_to_ptr.vmem [resolvable:$true] %s2720_s28 }
 0x6b9   : > { %p3968_p0 = scmp.lt.s32.totalorder %s4883_s28, %s3966_s13 }
 0x71a   : > { %v1765_v23 = vpop.xlane.xlu1 %1764 }
 0x71b   : > { %v3245_v30 = vpop.f32.mrb[8].mxu1  ;;  %v1768_v40 = vpop.xlane.xlu0 %1767  ;;  %3913 = vrcp.f32 %v1765_v23 }
 0x71c   : > { %v1223_v18 = vpop.f32.mrb[9].mxu1  ;;  %3915 = vrcp.f32 %v1768_v40 }
 0x71d   : > { %3257 = vmatprep.mubr.msk.f32.mxu1 %vm422_vm1, %v1223_v18 }
 0x71e   : > { %3258 = vmatmul.mubr.msk.f32.vlgmr.msra.gmra.mrb[16].mxu1 %vm422_vm1, %v3245_v30  ;;  %v1771_v33 = vpop.xlane.xlu1 %1770 }
 0x71f   : > { %3270 = vmatpush3.msra.mxu1 %v826_v42  ;;  %v3248_v28 = vpop.f32.mrb[10].mxu1  ;;  %v2923_v42 = vld [vmem:[%s4928_s5 + $0xe8] sm:$0xff]  ;;  %3917 = vrcp.f32 %v1771_v33 }
 0x720   : > { %3536 = vmatprep.subr.bf16.mxu1 %v3535_v32  ;;  %v1233_v38 = vpop.f32.mrb[11].mxu1 }
 0x721   : > { %3260 = vmatprep.mubr.msk.f32.mxu1 %vm422_vm1, %v1233_v38 }
 0x722   : > { %v4679_v36 = vpop.xlane.xlu0 %1773  ;;  %3261 = vmatmul.mubr.msk.f32.gmra.mrb[18].mxu1 %vm422_vm1, %v3248_v28  ;;  %v4686_v22 = vpop.xlane.xlu1 %1776 }
 0x723   : > { %v3251_v0 = vpop.f32.mrb[12].mxu1  ;;  %3919 = vrcp.f32 %v4679_v36 }
 0x724   : > { %v1243_v1 = vpop.f32.mrb[13].mxu1  ;;  %3921 = vrcp.f32 %v4686_v22 }
 0x725   : > { %3263 = vmatprep.mubr.msk.f32.mxu1 %vm422_vm1, %v1243_v1  ;;  %v3914_v23 = vpop.eup %3913  ;;  %v2925_v1 = vld [vmem:[%s4928_s5 + $0xf8] sm:$0xff] }
 0x726   : > { %v4683_v44 = vpop.xlane.xlu0 %1779  ;;  %3264 = vmatmul.mubr.msk.f32.gmra.mrb[20].mxu1 %vm422_vm1, %v3251_v0  ;;  %v3805_v31 = vpop.permute.xlu1 %3804  ;;  %v1788_v36 = vmul.f32 %v3914_v23, %v4630_v54 }
 0x727   : > { %v3254_v39 = vpop.f32.mrb[14].mxu1  ;;  %v3807_v57 = vunpack.i.h.bf16 %v3805_v31  ;;  %v3806_v3 = vunpack.i.l.bf16 %v3805_v31  ;;  %3923 = vrcp.f32 %v4683_v44 }
 0x728   : > { %v1253_v15 = vpop.f32.mrb[15].mxu1 }
 0x729   : > { %3266 = vmatprep.mubr.msk.f32.mxu1 %vm422_vm1, %v1253_v15  ;;  %v3543_v40 = vpack.c.bf16 %v3807_v57, %v3806_v3 }
 0x72a   : > { %v4689_v6 = vpop.xlane.xlu0 %1785  ;;  %3267 = vmatmul.mubr.msk.f32.gmra.mrb[22].mxu1 %vm422_vm1, %v3254_v39  ;;  %v3810_v60 = vpop.permute.xlu1 %3809 }
 0x72b   : > { %3271 = vmatprep.mubr.msk.f32.mxu1 %vm422_vm1, %v4404_v5  ;;  %v3812_v28 = vunpack.i.h.bf16 %v3810_v60  ;;  %v3811_v38 = vunpack.i.l.bf16 %v3810_v60 }
 0x72c   : > { %v3371_v4 = vpop.f32.mrb[32].mxu0 }
 0x72d   : > { %v2264_v20 = vmul.f32 0.35355338, %v3371_v4  ;;  %v2224_v49 = vpop.f32.mrb[33].mxu0 }
 0x72e   : > { %v2263_v26 = vmul.f32 0.35355338, %v2224_v49  ;;  %v4700_v53 = vpop.xlane.xlu0 %1782  ;;  %3272 = vmatmul.mubr.msk.f32.vlgmr.msra.gmra.mrb[16].mxu1 %vm422_vm1, %v4402_v2  ;;  %v2920_v2 = vld [vmem:[%s4928_s5 + $0xd0] sm:$0xff]  ;;  %v3547_v49 = vpack.c.bf16 %v3812_v28, %v3811_v38 }
 0x72f   : > { %v4704_v5 = vadd.f32 %v2919_v47, %v2264_v20  ;;  %3538 = vmatpush3.bf16.msra.mxu1 %v3535_v32  ;;  %3274 = vmatprep.mubr.msk.f32.mxu1 %vm422_vm1, %v4408_v8  ;;  %3925 = vrcp.f32 %v4700_v53 }
 0x730   : > { %v4708_v14 = vadd.f32 %v2918_v52, %v2263_v26  ;;  %v3374_v13 = vpop.f32.mrb[34].mxu0  ;;  %v3916_v26 = vpop.eup %3915  ;;  %3927 = vrcp.f32 %v4689_v6 }
 0x731   : > { %v2266_v46 = vmul.f32 0.35355338, %v3374_v13  ;;  %v2234_v17 = vpop.f32.mrb[35].mxu0  ;;  %v2291_v48 = vsel %vm584_vm3, %v4704_v5, -inf  ;;  %v1790_v31 = vmul.f32 %v3916_v26, %v4633_v50 }
 0x732   : > { %v2265_v56 = vmul.f32 0.35355338, %v2234_v17  ;;  %2292 = vmax.xlane.f32.xlu0 %v2291_v48  ;;  %v3800_v59 = vpop.permute.xlu0 %3799  ;;  %v2288_v8 = vsel %vm584_vm3, %v4708_v14, -inf  ;;  %3275 = vmatmul.mubr.msk.f32.gmra.mrb[18].mxu1 %vm422_vm1, %v4406_v7 }
 0x733   : > { %v4722_v58 = vadd.f32 %v2921_v45, %v2266_v46  ;;  %v3802_v27 = vunpack.i.h.bf16 %v3800_v59  ;;  %v3801_v55 = vunpack.i.l.bf16 %v3800_v59  ;;  %2289 = vmax.xlane.f32.xlu1 %v2288_v8  ;;  %3277 = vmatprep.mubr.msk.f32.mxu1 %vm422_vm1, %v4412_v10 }
 0x734   : > { %v4726_v41 = vadd.f32 %v2920_v2, %v2265_v56  ;;  %v3377_v37 = vpop.f32.mrb[36].mxu0 }
 0x735   : > { %v3539_v7 = vpack.c.bf16 %v3802_v27, %v3801_v55  ;;  %v2268_v16 = vmul.f32 0.35355338, %v3377_v37  ;;  %v2244_v21 = vpop.f32.mrb[37].mxu0  ;;  %v2297_v10 = vsel %vm584_vm3, %v4722_v58, -inf }
 0x736   : > { %v2267_v30 = vmul.f32 0.35355338, %v2244_v21  ;;  %2298 = vmax.xlane.f32.xlu0 %v2297_v10  ;;  %v2294_v18 = vsel %vm584_vm3, %v4726_v41, -inf  ;;  %3278 = vmatmul.mubr.msk.f32.gmra.mrb[20].mxu1 %vm422_vm1, %v4410_v9 }
 0x737   : > { %v4740_v32 = vadd.f32 %v2923_v42, %v2268_v16  ;;  %2295 = vmax.xlane.f32.xlu1 %v2294_v18  ;;  %3280 = vmatprep.mubr.msk.f32.mxu1 %vm422_vm1, %v4416_v12  ;;  %v2924_v12 = vld [vmem:[%s4928_s5 + $0xf0] sm:$0xff] }
 0x738   : > { %v4744_v0 = vadd.f32 %v2922_v25, %v2267_v30  ;;  %3540 = vmatprep.subr.bf16.mxu1 %v3539_v7  ;;  %v3380_v33 = vpop.f32.mrb[38].mxu0 }
 0x739   : > { %v2270_v9 = vmul.f32 0.35355338, %v3380_v33  ;;  %3542 = vmatpush3.bf16.msra.mxu1 %v3539_v7  ;;  %v2254_v39 = vpop.f32.mrb[39].mxu0  ;;  %v2303_v15 = vsel %vm584_vm3, %v4740_v32, -inf }
 0x73a   : > { %v2269_v4 = vmul.f32 0.35355338, %v2254_v39  ;;  %2304 = vmax.xlane.f32.xlu0 %v2303_v15  ;;  %3544 = vmatprep.subr.bf16.mxu1 %v3543_v40  ;;  %v2300_v47 = vsel %vm584_vm3, %v4744_v0, -inf }
 0x73b   : > { %v4759_v20 = vadd.f32 %v2925_v1, %v2270_v9  ;;  %2301 = vmax.xlane.f32.xlu1 %v2300_v47  ;;  %3281 = vmatmul.mubr.msk.f32.gmra.mrb[22].mxu1 %vm422_vm1, %v4414_v11  ;;  %v3918_v11 = vpop.eup %3917 }
 0x73c   : > { %v4763_v52 = vadd.f32 %v2924_v12, %v2269_v4  ;;  %3327 = vmatprep.mubr.msk.f32.mxu1 %vm584_vm3, %v1788_v36  ;;  %v3920_v44 = vpop.eup %3919  ;;  %v1792_v13 = vmul.f32 %v3918_v11, %v4640_v43 }
 0x73d   : > { %3546 = vmatpush3.bf16.msra.mxu1 %v3543_v40  ;;  %v2309_v22 = vsel %vm584_vm3, %v4759_v20, -inf  ;;  %v3922_v45 = vpop.eup %3921  ;;  %v1794_v53 = vmul.f32 %v3920_v44, %v4646_v63 }
 0x73e   : > { %2310 = vmax.xlane.f32.xlu0 %v2309_v22  ;;  %3548 = vmatprep.subr.bf16.mxu1 %v3547_v49  ;;  %v2306_v54 = vsel %vm584_vm3, %v4763_v52, -inf  ;;  %v3924_v46 = vpop.eup %3923  ;;  %v1796_v17 = vmul.f32 %v3922_v45, %v4644_v61  ;;  %v1956_v61 = vld [vmem:[%s4926_s3 + $0x10] sm:$0xff] }
 0x73f   : > { %2307 = vmax.xlane.f32.xlu1 %v2306_v54  ;;  %v3926_v2 = vpop.eup %3925  ;;  %v1798_v50 = vmul.f32 %v3924_v46, %v4652_v62 }
 0x740   : > { %v3928_v6 = vpop.eup %3927  ;;  %v1800_v43 = vmul.f32 %v3926_v2, %v4663_v51 }
 0x741   : > { %3550 = vmatpush3.bf16.msra.mxu1 %v3547_v49  ;;  %v1802_v48 = vmul.f32 %v3928_v6, %v4656_v35 }
 0x742   : > { %3339 = vmatprep.subr.mxu1 %v1956_v61 }
 0x744   : > { %3328 = vmatmul.mubr.msk.f32.vlgmr.msra.gmra.mrb[24].mxu1 %vm584_vm3, %v1790_v31 }
 0x745   : > { %3330 = vmatprep.mubr.msk.f32.mxu1 %vm584_vm3, %v1792_v13  ;;  %3340 = vmatpush3.msra.mxu1 %v1956_v61 }
 0x748   : > { %3331 = vmatmul.mubr.msk.f32.gmra.mrb[26].mxu1 %vm584_vm3, %v1794_v53 }
 0x749   : > { %3333 = vmatprep.mubr.msk.f32.mxu1 %vm584_vm3, %v1796_v17 }
 0x74c   : > { %3334 = vmatmul.mubr.msk.f32.gmra.mrb[28].mxu1 %vm584_vm3, %v1798_v50 }
 0x74d   : > { %3336 = vmatprep.mubr.msk.f32.mxu1 %vm584_vm3, %v1800_v43 }
 0x750   : > { %3814 = vrot.lane.b32.xlu1 %v4156_v19, %s4035_s12  ;;  %3337 = vmatmul.mubr.msk.f32.gmra.mrb[30].mxu1 %vm584_vm3, %v1802_v48 }
 0x7bf   : > { %v2293_v63 = vpop.xlane.xlu0 %2292 }
 0x7c0   : > { %v2313_v62 = vsub.f32 %v4704_v5, %v2293_v63  ;;  %v2290_v51 = vpop.xlane.xlu1 %2289 }
 0x7c1   : > { %v2312_v56 = vsub.f32 %v4708_v14, %v2290_v51 }
 0x7c2   : > { %v2322_v59 = vmul.f32 1.442695, %v2313_v62 }
 0x7c3   : > { %v2320_v35 = vmul.f32 1.442695, %v2312_v56  ;;  %v2299_v8 = vpop.xlane.xlu0 %2298 }
 0x7c4   : > { %3929 = vpow2.f32 %v2322_v59  ;;  %v2315_v19 = vsub.f32 %v4722_v58, %v2299_v8  ;;  %v2296_v27 = vpop.xlane.xlu1 %2295 }
 0x7c5   : > { %3931 = vpow2.f32 %v2320_v35  ;;  %v2314_v55 = vsub.f32 %v4726_v41, %v2296_v27 }
 0x7c6   : > { %v2326_v57 = vmul.f32 1.442695, %v2315_v19 }
 0x7c7   : > { %v2324_v3 = vmul.f32 1.442695, %v2314_v55  ;;  %v2305_v37 = vpop.xlane.xlu0 %2304 }
 0x7c8   : > { %3933 = vpow2.f32 %v2326_v57  ;;  %v2317_v42 = vsub.f32 %v4740_v32, %v2305_v37  ;;  %v2302_v5 = vpop.xlane.xlu1 %2301 }
 0x7c9   : > { %3935 = vpow2.f32 %v2324_v3  ;;  %v2316_v14 = vsub.f32 %v4744_v0, %v2302_v5  ;;  %v2529_v5 = vld [vmem:[%s4926_s3 + $0x18] sm:$0xff] }
 0x7ca   : > { %v2330_v60 = vmul.f32 1.442695, %v2317_v42 }
 0x7cb   : > { %v2328_v7 = vmul.f32 1.442695, %v2316_v14  ;;  %v2311_v16 = vpop.xlane.xlu0 %2310 }
 0x7cc   : > { %3937 = vpow2.f32 %v2330_v60  ;;  %v2319_v58 = vsub.f32 %v4759_v20, %v2311_v16  ;;  %v2308_v21 = vpop.xlane.xlu1 %2307 }
 0x7cd   : > { %3939 = vpow2.f32 %v2328_v7  ;;  %v2318_v41 = vsub.f32 %v4763_v52, %v2308_v21 }
 0x7ce   : > { %v4800_v25 = vpop.eup %3929  ;;  %v2334_v10 = vmul.f32 1.442695, %v2319_v58 }
 0x7cf   : > { %v3932_v30 = vpop.eup %3931  ;;  %v2332_v18 = vmul.f32 1.442695, %v2318_v41  ;;  %v2339_v23 = vsel %vm584_vm3, %v4800_v25, 0.0 }
 0x7d0   : > { %3941 = vpow2.f32 %v2334_v10  ;;  %2340 = vadd.xlane.f32.xlu0 %v2339_v23  ;;  %v3815_v32 = vpop.permute.xlu1 %3814  ;;  %v2336_v40 = vsel %vm584_vm3, %v3932_v30, 0.0 }
 0x7d1   : > { %v3817_v28 = vunpack.i.h.bf16 %v3815_v32  ;;  %v3816_v38 = vunpack.i.l.bf16 %v3815_v32  ;;  %2337 = vadd.xlane.f32.xlu1 %v2336_v40  ;;  %3943 = vpow2.f32 %v2332_v18 }
 0x7d2   : > { %v4805_v0 = vpop.eup %3933 }
 0x7d3   : > { %v4807_v33 = vpop.eup %3935  ;;  %v3575_v1 = vpack.c.bf16 %v3817_v28, %v3816_v38  ;;  %v2345_v9 = vsel %vm584_vm3, %v4805_v0, 0.0 }
 0x7d4   : > { %2346 = vadd.xlane.f32.xlu0 %v2345_v9  ;;  %v2342_v39 = vsel %vm584_vm3, %v4807_v33, 0.0 }
 0x7d5   : > { %2343 = vadd.xlane.f32.xlu1 %v2342_v39  ;;  %3576 = vmatprep.subr.bf16.mxu0 %v3575_v1 }
 0x7d6   : > { %v4813_v12 = vpop.eup %3937  ;;  %3591 = vmatprep.subr.bf16.mxu1 %v3575_v1  ;;  %3578 = vmatpush3.bf16.msra.mxu0 %v3575_v1 }
 0x7d7   : > { %v4815_v15 = vpop.eup %3939  ;;  %v2351_v4 = vsel %vm584_vm3, %v4813_v12, 0.0 }
 0x7d8   : > { %2352 = vadd.xlane.f32.xlu0 %v2351_v4  ;;  %v2348_v47 = vsel %vm584_vm3, %v4815_v15, 0.0 }
 0x7d9   : > { %2349 = vadd.xlane.f32.xlu1 %v2348_v47 }
 0x7da   : > { %v4821_v36 = vpop.eup %3941 }
 0x7db   : > { %v2357_v20 = vsel %vm584_vm3, %v4821_v36, 0.0  ;;  %v3944_v49 = vpop.eup %3943 }
 0x7dc   : > { %2358 = vadd.xlane.f32.xlu0 %v2357_v20  ;;  %v2354_v52 = vsel %vm584_vm3, %v3944_v49, 0.0 }
 0x7e0   : > { %2355 = vadd.xlane.f32.xlu0 %v2354_v52 }
 0x7ea   : > { %3824 = vrot.lane.b32.xlu1 %v4174_v29, %s4035_s12 }
 0x7ee   : > { %3829 = vrot.lane.b32.xlu1 %v4183_v34, %s4035_s12 }
 0x7f6   : > { %3819 = vrot.lane.b32.xlu0 %v4165_v24, %s4035_s12  ;;  %s3961_s12 = scalar_lea.vmem %s4883_s28, 16 }
 0x7f7   : > { %p3962_p11 = scmp.ne.s32.totalorder %s4883_s28, %s3961_s12  ;;  %p3969_p1 = scmp.lt.s32.totalorder %s3967_s14, %s3961_s12 }
 0x7f9   : > { %p3963_p12 = pnand %p3962_p11, %p4110_p5  ;;  %p3970_p2 = por %p3969_p1, %p3968_p0 }
 0x7fb   : > { %p3964_p13 = pneg %p3963_p12 }
 0x7fd   : > { %p3971_p3 = pnand %p3970_p2, %p3964_p13 }
 0x817   : > { %v3329_v22 = vpop.f32.mrb[24].mxu1 }
 0x818   : > { %v1917_v54 = vpop.f32.mrb[25].mxu1 }
 0x819   : > { %3341 = vmatprep.mubr.msk.f32.mxu1 %vm422_vm1, %v1917_v54 }
 0x81a   : > { %3342 = vmatmul.mubr.msk.f32.vlgmr.msra.gmra.mrb[16].mxu1 %vm422_vm1, %v3329_v22 }
 0x81b   : > { %3595 = vmatpush3.bf16.msra.mxu1 %v3575_v1  ;;  %v3332_v26 = vpop.f32.mrb[26].mxu1  ;;  %v2942_v1 = vld [vmem:[%s4927_s4] ss:$0 sm:$0xff] }
 0x81c   : > { %v1927_v11 = vpop.f32.mrb[27].mxu1 }
 0x81d   : > { %3344 = vmatprep.mubr.msk.f32.mxu1 %vm422_vm1, %v1927_v11 }
 0x81e   : > { %3345 = vmatmul.mubr.msk.f32.gmra.mrb[18].mxu1 %vm422_vm1, %v3332_v26 }
 0x81f   : > { %v3335_v29 = vpop.f32.mrb[28].mxu1 }
 0x820   : > { %v1937_v31 = vpop.f32.mrb[29].mxu1 }
 0x821   : > { %3347 = vmatprep.mubr.msk.f32.mxu1 %vm422_vm1, %v1937_v31 }
 0x822   : > { %3348 = vmatmul.mubr.msk.f32.gmra.mrb[20].mxu1 %vm422_vm1, %v3335_v29 }
 0x823   : > { %v3338_v24 = vpop.f32.mrb[30].mxu1 }
 0x824   : > { %v1947_v34 = vpop.f32.mrb[31].mxu1 }
 0x825   : > { %3350 = vmatprep.mubr.msk.f32.mxu1 %vm422_vm1, %v1947_v34 }
 0x826   : > { %3351 = vmatmul.mubr.msk.f32.gmra.mrb[22].mxu1 %vm422_vm1, %v3338_v24 }
 0x85d   : > { %v2341_v44 = vpop.xlane.xlu0 %2340 }
 0x85e   : > { %v2338_v13 = vpop.xlane.xlu1 %2337 }
 0x85f   : > { %3945 = vrcp.f32 %v2338_v13 }
 0x861   : > { %v2347_v45 = vpop.xlane.xlu0 %2346 }
 0x862   : > { %v2344_v53 = vpop.xlane.xlu1 %2343 }
 0x865   : > { %v2353_v46 = vpop.xlane.xlu0 %2352 }
 0x866   : > { %v2350_v17 = vpop.xlane.xlu1 %2349 }
 0x869   : > { %v3946_v2 = vpop.eup %3945  ;;  %v2359_v50 = vpop.xlane.xlu0 %2358 }
 0x86a   : > { %v2361_v6 = vmul.f32 %v3946_v2, %v3932_v30  ;;  %v3825_v43 = vpop.permute.xlu1 %3824 }
 0x86b   : > { %v3827_v63 = vunpack.i.h.bf16 %v3825_v43  ;;  %v3826_v62 = vunpack.i.l.bf16 %v3825_v43 }
 0x86c   : > { %3397 = vmatprep.mubr.msk.f32.mxu0 %vm584_vm3, %v2361_v6 }
 0x86d   : > { %v2356_v48 = vpop.xlane.xlu0 %2355  ;;  %v3583_v8 = vpack.c.bf16 %v3827_v63, %v3826_v62 }
 0x86e   : > { %3947 = vrcp.f32 %v2356_v48  ;;  %v3830_v59 = vpop.permute.xlu1 %3829 }
 0x86f   : > { %3949 = vrcp.f32 %v2341_v44  ;;  %v3832_v19 = vunpack.i.h.bf16 %v3830_v59  ;;  %v3831_v27 = vunpack.i.l.bf16 %v3830_v59 }
 0x870   : > { %3951 = vrcp.f32 %v2359_v50 }
 0x871   : > { %v3820_v61 = vpop.permute.xlu0 %3819  ;;  %3953 = vrcp.f32 %v2344_v53  ;;  %v3587_v3 = vpack.c.bf16 %v3832_v19, %v3831_v27 }
 0x872   : > { %v3822_v51 = vunpack.i.h.bf16 %v3820_v61  ;;  %v3821_v56 = vunpack.i.l.bf16 %v3820_v61  ;;  %3955 = vrcp.f32 %v2347_v45 }
 0x873   : > { %3957 = vrcp.f32 %v2350_v17 }
 0x874   : > { %v3579_v35 = vpack.c.bf16 %v3822_v51, %v3821_v56  ;;  %3959 = vrcp.f32 %v2353_v46 }
 0x876   : > { %3580 = vmatprep.subr.bf16.mxu0 %v3579_v35  ;;  %3592 = vmatprep.subr.bf16.mxu1 %v3579_v35 }
 0x877   : > { %3582 = vmatpush3.bf16.msra.mxu0 %v3579_v35  ;;  %3596 = vmatpush3.bf16.msra.mxu1 %v3579_v35 }
 0x878   : > { %v3948_v55 = vpop.eup %3947  ;;  %3584 = vmatprep.subr.bf16.mxu0 %v3583_v8  ;;  %3593 = vmatprep.subr.bf16.mxu1 %v3583_v8 }
 0x879   : > { %v2373_v57 = vmul.f32 %v3948_v55, %v3944_v49  ;;  %v3950_v37 = vpop.eup %3949 }
 0x87a   : > { %v3952_v42 = vpop.eup %3951  ;;  %v2363_v60 = vmul.f32 %v3950_v37, %v4800_v25 }
 0x87b   : > { %3586 = vmatpush3.bf16.msra.mxu0 %v3583_v8  ;;  %3597 = vmatpush3.bf16.msra.mxu1 %v3583_v8  ;;  %v3954_v14 = vpop.eup %3953  ;;  %v2375_v7 = vmul.f32 %v3952_v42, %v4821_v36 }
 0x87c   : > { %3406 = vmatprep.mubr.msk.f32.mxu1 %vm584_vm3, %v2373_v57  ;;  %3588 = vmatprep.subr.bf16.mxu0 %v3587_v3  ;;  %v3956_v16 = vpop.eup %3955  ;;  %v2365_v58 = vmul.f32 %v3954_v14, %v4807_v33 }
 0x87d   : > { %3594 = vmatprep.subr.bf16.mxu1 %v3587_v3  ;;  %v3958_v21 = vpop.eup %3957  ;;  %v2367_v41 = vmul.f32 %v3956_v16, %v4805_v0 }
 0x87e   : > { %v3960_v10 = vpop.eup %3959  ;;  %v2369_v30 = vmul.f32 %v3958_v21, %v4815_v15 }
 0x87f   : > { %3590 = vmatpush3.bf16.msra.mxu0 %v3587_v3  ;;  %3598 = vmatpush3.bf16.msra.mxu1 %v3587_v3  ;;  %v2371_v25 = vmul.f32 %v3960_v10, %v4813_v12 }
 0x880   : > { %3409 = vmatprep.subr.mxu1 %v2529_v5 }
 0x882   : > { %3398 = vmatmul.mubr.msk.f32.vlgmr.msra.gmra.mrb[40].mxu0 %vm584_vm3, %v2363_v60  ;;  %3407 = vmatmul.mubr.msk.f32.vlgmr.msra.gmra.mrb[32].mxu1 %vm584_vm3, %v2375_v7 }
 0x883   : > { %3400 = vmatprep.mubr.msk.f32.mxu0 %vm584_vm3, %v2365_v58  ;;  %3410 = vmatpush3.msra.mxu1 %v2529_v5 }
 0x886   : > { %3401 = vmatmul.mubr.msk.f32.gmra.mrb[42].mxu0 %vm584_vm3, %v2367_v41 }
 0x887   : > { %3403 = vmatprep.mubr.msk.f32.mxu0 %vm584_vm3, %v2369_v30 }
 0x88a   : > { %3404 = vmatmul.mubr.msk.f32.gmra.mrb[44].mxu0 %vm584_vm3, %v2371_v25 }
 0x955   : > { %v3399_v18 = vpop.f32.mrb[40].mxu0  ;;  %v3408_v23 = vpop.f32.mrb[32].mxu1 }
 0x956   : > { %v2490_v32 = vpop.f32.mrb[41].mxu0  ;;  %v2520_v40 = vpop.f32.mrb[33].mxu1 }
 0x957   : > { %3411 = vmatprep.mubr.msk.f32.mxu1 %vm422_vm1, %v2490_v32 }
 0x958   : > { %3412 = vmatmul.mubr.msk.f32.vlgmr.msra.gmra.mrb[16].mxu1 %vm422_vm1, %v3399_v18 }
 0x959   : > { %v3402_v28 = vpop.f32.mrb[42].mxu0 }
 0x95a   : > { %v2500_v38 = vpop.f32.mrb[43].mxu0 }
 0x95b   : > { %3414 = vmatprep.mubr.msk.f32.mxu1 %vm422_vm1, %v2500_v38 }
 0x95c   : > { %3415 = vmatmul.mubr.msk.f32.gmra.mrb[18].mxu1 %vm422_vm1, %v3402_v28 }
 0x95d   : > { %v3405_v0 = vpop.f32.mrb[44].mxu0 }
 0x95e   : > { %v2510_v33 = vpop.f32.mrb[45].mxu0 }
 0x95f   : > { %3417 = vmatprep.mubr.msk.f32.mxu1 %vm422_vm1, %v2510_v33 }
 0x960   : > { %3418 = vmatmul.mubr.msk.f32.gmra.mrb[20].mxu1 %vm422_vm1, %v3405_v0 }
 0x961   : > { %3420 = vmatprep.mubr.msk.f32.mxu1 %vm422_vm1, %v2520_v40 }
 0x964   : > { %3421 = vmatmul.mubr.msk.f32.gmra.mrb[22].mxu1 %vm422_vm1, %v3408_v23 }
 0xa2b   : > { %v3413_v9 = vpop.f32.mrb[16].mxu1 }
 0xa2c   : > { %v2675_v39 = vadd.f32 %v3413_v9, %v2942_v1  ;;  %v2620_v12 = vpop.f32.mrb[17].mxu1 }
 0xa2d   : > { %v2674_v15 = vadd.f32 %v2942_v1, %v2620_v12 }
 0xa2e   : > { %v2683_v4 = vsel %vm268_vm0, %v2675_v39, 0.0 }
 0xa2f   : > { %v2682_v47 = vsel %vm268_vm0, %v2674_v15, 0.0  ;;  %v3416_v36 = vpop.f32.mrb[18].mxu1 }
 0xa30   : > { %v2684_v20 = vadd.f32 %v2683_v4, %v2682_v47  ;;  %v2630_v49 = vpop.f32.mrb[19].mxu1  ;;  %v2677_v52 = vadd.f32 %v3416_v36, %v2942_v1 }
 0xa31   : > { %v2676_v22 = vadd.f32 %v2942_v1, %v2630_v49 }
 0xa32   : > { %v2687_v31 = vsel %vm268_vm0, %v2677_v52, 0.0 }
 0xa33   : > { %v2685_v54 = vsel %vm268_vm0, %v2676_v22, 0.0  ;;  %v3419_v26 = vpop.f32.mrb[20].mxu1 }
 0xa34   : > { %v2686_v11 = vadd.f32 %v2685_v54, %v2684_v20  ;;  %v2640_v29 = vpop.f32.mrb[21].mxu1  ;;  %v2679_v24 = vadd.f32 %v3419_v26, %v2942_v1 }
 0xa35   : > { %v2678_v34 = vadd.f32 %v2942_v1, %v2640_v29 }
 0xa36   : > { %v2688_v44 = vadd.f32 %v2687_v31, %v2686_v11  ;;  %v2691_v17 = vsel %vm268_vm0, %v2679_v24, 0.0 }
 0xa37   : > { %v2689_v13 = vsel %vm268_vm0, %v2678_v34, 0.0  ;;  %v3422_v45 = vpop.f32.mrb[22].mxu1 }
 0xa38   : > { %v2690_v53 = vadd.f32 %v2689_v13, %v2688_v44  ;;  %v2650_v46 = vpop.f32.mrb[23].mxu1  ;;  %v2681_v2 = vadd.f32 %v3422_v45, %v2942_v1 }
 0xa39   : > { %v2680_v50 = vadd.f32 %v2942_v1, %v2650_v46 }
 0xa3a   : > { %v2692_v6 = vadd.f32 %v2691_v17, %v2690_v53  ;;  %v2695_v61 = vsel %vm268_vm0, %v2681_v2, 0.0 }
 0xa3b   : > { %v2693_v43 = vsel %vm268_vm0, %v2680_v50, 0.0 }
 0xa3c   : > { %v2694_v48 = vadd.f32 %v2693_v43, %v2692_v6 }
 0xa3e   : > { %v2696_v63 = vadd.f32 %v2695_v61, %v2694_v48 }
 0xa40   : > { %v2697_v62 = vrot.slane %v2696_v63, 4 }
 0xa42   : > { %v2698_v51 = vadd.f32 %v2697_v62, %v2696_v63 }
 0xa44   : > { %v2699_v56 = vrot.slane %v2698_v51, 2 }
 0xa46   : > { %v2700_v59 = vadd.f32 %v2699_v56, %v2698_v51 }
 0xa48   : > { %v2701_v35 = vrot.slane %v2700_v59, 1 }
 0xa4a   : > { %v2702_v8 = vadd.f32 %v2701_v35, %v2700_v59 }
 0xa4c   : > { %v2704_v19 = vmul.f32 0.015625, %v2702_v8 }
 0xa4e   : > { %2706 = vst.msk [vmem:[%s243_s26] sm:$0x1] %vm2705_vm4, %v2704_v19 }
 0xa4f   : > { %3974 = shalt.err (!%p3971_p3)
}
 0xa50   : > { %s3975_s15 = scalar_lea.hbm %s4881_s10, 16  ;;  %s3979_s18 = scalar_lea.hbm %s4929_s6, 32 }
 0xa51   : > { %p3976_p4 = scmp.ne.s32.totalorder %s4881_s10, %s3975_s15  ;;  %p3980_p9 = scmp.lt.u32.totalorder %s4881_s10, %s4929_s6 }
 0xa52   : > { %p3981_p10 = scmp.lt.u32.totalorder %s3979_s18, %s3975_s15  ;;  %p3983_p12 = scmp.lt.u32.totalorder %s3975_s15, %s4881_s10 }
 0xa53   : > { %p3977_p7 = pnand %p3976_p4, %p4110_p5 }
 0xa54   : > { %p3982_p11 = por %p3981_p10, %p3980_p9 }
 0xa55   : > { %p3978_p8 = pneg %p3977_p7 }
 0xa56   : > { %p3984_p13 = por %p3983_p12, %p3982_p11 }
 0xa58   : > { %p3985_p0 = pnand %p3984_p13, %p3978_p8 }
 0xa5a   : > { %3988 = shalt.err (!%p3985_p0)
}
 0xa5b   : > { %3623 = dma.vmem_to_hbm [thread:$0]  (%p4110_p5), %s4883_s28, 16, %s4881_s10, %s2708_s11  }
 0xa5c PF: > { %p3629_p1 = scmp.ge.s32.totalorder %s4023_s24, 2  ;;  %s2732_s26 = sand.u32 1, %s4011_s21  }
 0xa5d   : > { %s2733_s29 = scalar_lea.sflag [#allocation3], %s2732_s26 }
 0xa5e   : > { %p3626_p2 = pnand %p3629_p1, %p4114_p6 }
 0xa60   : > { %4006 = dma.done.wait (!%p3626_p2), %s2733_s29, 16  }
 0xa61   : > { %4008 = vsyncadd (!%p3626_p2), %s2733_s29, 4294967280  ;;  %p16_p3 = scmp.ge.s32.totalorder %s4097_s27, 4   ;;  %s4934_s21 = smov %s4015_s22 }
 0xa62   : > { %s4935_s22 = smov %s4019_s23  ;;  %s4936_s23 = smov %s4108_s30 }
 0xa63   : > { %s4937_s24 = smov %s4097_s27  ;;  %18 = sbr.rel (!%p16_p3) target bundleno = 3 (0x3), region = 82 }
 0xa6a   :  { %2737 = vsyncpa [#allocation3], 1 }
 0xa6b   :  { %2739 = vsyncpa [#allocation3 + $0x1], 1 }

</bundles_post_ra>
